<compile_context>
chip_gen: v6e
topology: v6e:2x2x1
jax: 0.10.0
libtpu: 0.0.40
codegen_flags: <defaults>
</compile_context>

<pallas_src>
import functools

import jax
import jax.numpy as jnp
from jax import lax
from jax.experimental import pallas as pl
from jax.experimental.pallas import tpu as pltpu

C_PAD = 128  # lane width: every channel dimension is zero-padded to this


# ---------------------------------------------------------------------------
# Fused encoder kernel
# ---------------------------------------------------------------------------
def _encoder_kernel(x_ref, w_ref, b_ref, seq_ref, emb_ref, act_ref, *,
                    lens, n_batch, normalize):
    """Fused SF2F encoder.

    x_ref:   [n_batch * lens[0], 128]    flattened channels-last input (padded lanes)
    w_ref:   [num_layers * 3, 128, 128]  per-tap weight matrices (BN scale folded in)
    b_ref:   [num_layers, 128]           fused BN shift / conv bias (0 in padded lanes)
    seq_ref: [n_batch * L_f, 128]        final conv output (lane-dense)
    emb_ref: [n_batch, 128]              pooled (+normalized) embedding (lane-dense)
    act_ref: VMEM scratch for the running activation, row index = n * L + l
    """
    num_layers = len(lens)
    y = None
    for li, L in enumerate(lens):
        lo = L // 2                       # k=3, s=2, p=1 with even L  =>  L_out = L // 2
        m_out = n_batch * lo
        src = x_ref if li == 0 else act_ref
        # Output position l consumes x_pad[2l], x_pad[2l+1], x_pad[2l+2]
        #   = x[2l-1] (previous odd, zero at l=0), x[2l] (even), x[2l+1] (odd).
        even = src[pl.ds(0, m_out, 2), :]             # [m_out, 128]  x[2l]
        odd = src[pl.ds(1, m_out, 2), :]              # [m_out, 128]  x[2l+1]
        parts = []
        for n in range(n_batch):                      # x[2l-1] with a per-batch zero row
            parts.append(jnp.zeros((1, C_PAD), jnp.float32))
            if lo > 1:
                parts.append(odd[n * lo:n * lo + lo - 1, :])
        tap0 = jnp.concatenate(parts, axis=0)         # [m_out, 128]

        w0 = w_ref[3 * li]
        w1 = w_ref[3 * li + 1]
        w2 = w_ref[3 * li + 2]
        y = (jnp.dot(tap0, w0, preferred_element_type=jnp.float32)
             + jnp.dot(even, w1, preferred_element_type=jnp.float32)
             + jnp.dot(odd, w2, preferred_element_type=jnp.float32))
        y = y + b_ref[pl.ds(li, 1), :]                # fused BN shift / conv bias
        if li < num_layers - 1:
            y = jnp.maximum(y, 0.0)                   # ReLU (not after the last conv)
            act_ref[pl.ds(0, m_out), :] = y           # stays in VMEM for the next layer

    # --- avg_pool1d over the full final length + F.normalize(dim=1) ---
    l_f = lens[-1] // 2
    seq_ref[...] = y                                  # [n_batch * l_f, 128]
    rows = []
    for n in range(n_batch):
        acc = y[n * l_f:n * l_f + 1, :]
        for l in range(1, l_f):
            acc = acc + y[n * l_f + l:n * l_f + l + 1, :]
        rows.append(acc)
    mean = jnp.concatenate(rows, axis=0) * (1.0 / l_f)    # [n_batch, 128]
    if normalize:
        sq = jnp.sum(mean * mean, axis=1, keepdims=True)
        # x / max(||x||, 1e-12)  ==  x * rsqrt(max(||x||^2, 1e-24))   (rsqrt -> EUP)
        mean = mean * lax.rsqrt(jnp.maximum(sq, 1e-24))
    emb_ref[...] = mean


# ---------------------------------------------------------------------------
# Parameter preparation (BN folded into weights ONCE, outside jit)
# ---------------------------------------------------------------------------
def prepare_fused_params(params, last, bn_eps=1e-5):
    """Returns (w_all [num_layers*3, 128, 128], b_all [num_layers, 128])."""
    def pad_taps(w_oik, bias):
        c_out, c_in, k = w_oik.shape
        taps = []
        for kk in range(k):
            wk = jnp.transpose(w_oik[:, :, kk])                     # [C_in, C_out]
            wk = jnp.pad(wk, ((0, C_PAD - c_in), (0, C_PAD - c_out)))
            taps.append(wk)
        return jnp.stack(taps, axis=0), jnp.pad(bias, (0, C_PAD - c_out))

    ws, bs = [], []
    for p in params:                      # conv + eval-mode BN + ReLU blocks
        scale = p['gamma'] / jnp.sqrt(p['var'] + bn_eps)
        shift = p['beta'] - p['mean'] * scale
        tw, tb = pad_taps(p['w'] * scale[:, None, None], shift)
        ws.append(tw)
        bs.append(tb)
    w_last, b_last = last                 # final conv with bias, no BN / ReLU
    tw, tb = pad_taps(w_last, b_last)
    ws.append(tw)
    bs.append(tb)
    return jnp.concatenate(ws, axis=0), jnp.stack(bs, axis=0)


# ---------------------------------------------------------------------------
# Forward pass wrapper
# ---------------------------------------------------------------------------
def sf2f_encoder_forward(x, w_all, b_all, *, output_channel, normalize=True,
                         return_seq=True):
    """x: [B, C, L] or [B, Nv, C, L] (PyTorch NCL convention), float32."""
    if x.ndim == 4:
        B, Nv, C, L = x.shape
        x = x.reshape(B * Nv, C, L)
    N, c_in, L0 = x.shape
    num_layers = w_all.shape[0] // 3
    assert c_in <= C_PAD

    lens = []
    L = L0
    for _ in range(num_layers):
        assert L % 2 == 0, "fused kernel assumes an even length at every stage"
        lens.append(L)
        L //= 2
    l_f = L
    lens = tuple(lens)

    # Tiny XLA glue: NCL -> flattened channels-last, zero-padded to 128 lanes.
    h = jnp.transpose(x, (0, 2, 1)).reshape(N * L0, c_in)
    h = jnp.pad(h, ((0, 0), (0, C_PAD - c_in)))

    kernel = functools.partial(_encoder_kernel, lens=lens, n_batch=N,
                               normalize=normalize)
    seq_p, emb_p = pl.pallas_call(
        kernel,
        out_shape=(jax.ShapeDtypeStruct((N * l_f, C_PAD), jnp.float32),
                   jax.ShapeDtypeStruct((N, C_PAD), jnp.float32)),
        in_specs=[pl.BlockSpec(memory_space=pltpu.MemorySpace.VMEM)] * 3,
        out_specs=(pl.BlockSpec(memory_space=pltpu.MemorySpace.VMEM),
                   pl.BlockSpec(memory_space=pltpu.MemorySpace.VMEM)),
        scratch_shapes=[pltpu.VMEM((N * lens[0] // 2, C_PAD), jnp.float32)],
    )(h, w_all, b_all)

    emb = emb_p[:, :output_channel].reshape(N, output_channel, 1, 1)
    # TODO(synk): add_noise path uses host-side torch.randn; config here uses
    # add_noise=False so it is intentionally omitted.
    if return_seq:
        seq = jnp.transpose(
            seq_p[:, :output_channel].reshape(N, l_f, output_channel), (0, 2, 1))
        return emb, seq
    return emb


# ---------------------------------------------------------------------------
# Deterministic synthetic params and a pure-JAX reference (for self-check)
# ---------------------------------------------------------------------------
def init_params(key, input_channel, channels, output_channel):
    params = []
    c_in = input_channel
    for c_out in channels:
        key, k1, k2, k3, k4, k5 = jax.random.split(key, 6)
        params.append(dict(
            w=0.1 * jax.random.normal(k1, (c_out, c_in, 3), jnp.float32),
            gamma=1.0 + 0.1 * jax.random.normal(k2, (c_out,), jnp.float32),
            beta=0.1 * jax.random.normal(k3, (c_out,), jnp.float32),
            mean=0.1 * jax.random.normal(k4, (c_out,), jnp.float32),
            var=jnp.abs(1.0 + 0.1 * jax.random.normal(k5, (c_out,), jnp.float32)),
        ))
        c_in = c_out
    key, k1, k2 = jax.random.split(key, 3)
    w_last = 0.1 * jax.random.normal(k1, (output_channel, c_in, 3), jnp.float32)
    b_last = 0.1 * jax.random.normal(k2, (output_channel,), jnp.float32)
    return params, (w_last, b_last)


def reference_forward(x, params, last, normalize=True):
    bn_eps = 1e-5
    h = x
    dn = ('NCH', 'OIH', 'NCH')
    for p in params:
        h = lax.conv_general_dilated(h, p['w'], (2,), ((1, 1),), dimension_numbers=dn)
        scale = p['gamma'] / jnp.sqrt(p['var'] + bn_eps)
        shift = p['beta'] - p['mean'] * scale
        h = jnp.maximum(h * scale[None, :, None] + shift[None, :, None], 0.0)
    w_last, b_last = last
    h = lax.conv_general_dilated(h, w_last, (2,), ((1, 1),), dimension_numbers=dn)
    h = h + b_last[None, :, None]
    emb = jnp.mean(h, axis=2)
    if normalize:
        nrm = jnp.sqrt(jnp.sum(emb * emb, axis=1, keepdims=True))
        emb = emb / jnp.maximum(nrm, 1e-12)
    return emb.reshape(h.shape[0], -1, 1, 1), h


# ---------------------------------------------------------------------------
if __name__ == "__main__":
    # model_config: input_channel=4, channels=[8,16,32,32], output_channel=32,
    # add_noise=False, normalize=True, return_seq=True, inception_mode=False
    input_channel, channels, output_channel = 4, [8, 16, 32, 32], 32

    key = jax.random.PRNGKey(0)
    key, pkey, xkey = jax.random.split(key, 3)
    params, last = init_params(pkey, input_channel, channels, output_channel)
    w_all, b_all = prepare_fused_params(params, last)   # BN folded once, outside jit

    # x: [B, C, L] = [2, 4, 64]  (L halves 5 times: 64->32->16->8->4->2)
    x = jax.random.normal(xkey, (2, input_channel, 64), jnp.float32)

    fwd = jax.jit(functools.partial(sf2f_encoder_forward,
                                    output_channel=output_channel,
                                    normalize=True, return_seq=True))
    emb, seq = fwd(x, w_all, b_all)
    jax.block_until_ready((emb, seq))

    assert emb.shape == (2, output_channel, 1, 1), emb.shape
    assert seq.shape == (2, output_channel, 2), seq.shape
    assert bool(jnp.all(jnp.isfinite(emb))) and bool(jnp.all(jnp.isfinite(seq)))

    # L2-normalized embeddings should have unit norm per sample.
    norms = jnp.sqrt(jnp.sum(emb.reshape(2, -1) ** 2, axis=-1))
    assert bool(jnp.all(jnp.abs(norms - 1.0) < 1e-4)), norms

    # Cross-check against a pure-JAX (XLA conv) reference of the same module.
    emb_ref, seq_ref = reference_forward(x, params, last, normalize=True)
    emb_err = float(jnp.max(jnp.abs(emb - emb_ref)))
    seq_err = float(jnp.max(jnp.abs(seq - seq_ref)))
    assert emb_err < 1e-4, emb_err
    assert seq_err < 1e-4, seq_err

    print("KERNEL_OK")
</pallas_src>

<mosaic_0001>
module attributes {stable_mosaic.version = 11 : i64} {
  func.func @_encoder_kernel(%arg0: memref<128x128xf32, #tpu.memory_space<vmem>>, %arg1: memref<15x128x128xf32, #tpu.memory_space<vmem>>, %arg2: memref<5x128xf32, #tpu.memory_space<vmem>>, %arg3: memref<4x128xf32, #tpu.memory_space<vmem>>, %arg4: memref<2x128xf32, #tpu.memory_space<vmem>>, %arg5: memref<64x128xf32, #tpu.memory_space<vmem>>) attributes {dimension_semantics = [], scalar_prefetch = 0 : i64, scratch_operands = 1 : i64, tpu.core_type = #tpu.core_type<tc>} {
    %c0 = arith.constant 0 : index
    %c0_0 = arith.constant 0 : index
    %0 = tpu.strided_load %arg0[%c0, %c0_0] {strides = array<i32: 2, 1>} : memref<128x128xf32, #tpu.memory_space<vmem>>, vector<64x128xf32>
    %c1 = arith.constant 1 : index
    %c0_1 = arith.constant 0 : index
    %1 = tpu.strided_load %arg0[%c1, %c0_1] {strides = array<i32: 2, 1>} : memref<128x128xf32, #tpu.memory_space<vmem>>, vector<64x128xf32>
    %cst = arith.constant 0.000000e+00 : f32
    %2 = vector.broadcast %cst : f32 to vector<1x128xf32>
    %3 = vector.extract_strided_slice %1 {offsets = [0, 0], sizes = [31, 128], strides = [1, 1]} : vector<64x128xf32> to vector<31x128xf32>
    %cst_2 = arith.constant 0.000000e+00 : f32
    %4 = vector.broadcast %cst_2 : f32 to vector<1x128xf32>
    %5 = vector.extract_strided_slice %1 {offsets = [32, 0], sizes = [31, 128], strides = [1, 1]} : vector<64x128xf32> to vector<31x128xf32>
    %6 = tpu.concatenate %2, %3, %4, %5 in 0 : vector<1x128xf32>, vector<31x128xf32>, vector<1x128xf32>, vector<31x128xf32> -> vector<64x128xf32>
    %c0_3 = arith.constant 0 : index
    %c0_4 = arith.constant 0 : index
    %c0_5 = arith.constant 0 : index
    %7 = vector.load %arg1[%c0_3, %c0_4, %c0_5] : memref<15x128x128xf32, #tpu.memory_space<vmem>>, vector<1x128x128xf32>
    %8 = vector.shape_cast %7 : vector<1x128x128xf32> to vector<128x128xf32>
    %c1_6 = arith.constant 1 : index
    %c0_7 = arith.constant 0 : index
    %c0_8 = arith.constant 0 : index
    %9 = vector.load %arg1[%c1_6, %c0_7, %c0_8] : memref<15x128x128xf32, #tpu.memory_space<vmem>>, vector<1x128x128xf32>
    %10 = vector.shape_cast %9 : vector<1x128x128xf32> to vector<128x128xf32>
    %c2 = arith.constant 2 : index
    %c0_9 = arith.constant 0 : index
    %c0_10 = arith.constant 0 : index
    %11 = vector.load %arg1[%c2, %c0_9, %c0_10] : memref<15x128x128xf32, #tpu.memory_space<vmem>>, vector<1x128x128xf32>
    %12 = vector.shape_cast %11 : vector<1x128x128xf32> to vector<128x128xf32>
    %cst_11 = arith.constant dense<0.000000e+00> : vector<64x128xf32>
    %13 = tpu.matmul %6, %8, %cst_11 {dimension_numbers = #tpu.dot_dimension_numbers<[1], [0], [0], [1], [0, 0, 1, 1], [], []>} : vector<64x128xf32>, vector<128x128xf32>, vector<64x128xf32> -> vector<64x128xf32>
    %cst_12 = arith.constant dense<0.000000e+00> : vector<64x128xf32>
    %14 = tpu.matmul %0, %10, %cst_12 {dimension_numbers = #tpu.dot_dimension_numbers<[1], [0], [0], [1], [0, 0, 1, 1], [], []>} : vector<64x128xf32>, vector<128x128xf32>, vector<64x128xf32> -> vector<64x128xf32>
    %15 = arith.addf %13, %14 : vector<64x128xf32>
    %cst_13 = arith.constant dense<0.000000e+00> : vector<64x128xf32>
    %16 = tpu.matmul %1, %12, %cst_13 {dimension_numbers = #tpu.dot_dimension_numbers<[1], [0], [0], [1], [0, 0, 1, 1], [], []>} : vector<64x128xf32>, vector<128x128xf32>, vector<64x128xf32> -> vector<64x128xf32>
    %17 = arith.addf %15, %16 : vector<64x128xf32>
    %c0_14 = arith.constant 0 : index
    %c0_15 = arith.constant 0 : index
    %18 = vector.load %arg2[%c0_14, %c0_15] : memref<5x128xf32, #tpu.memory_space<vmem>>, vector<1x128xf32>
    %19 = vector.broadcast %18 : vector<1x128xf32> to vector<64x128xf32>
    %20 = arith.addf %17, %19 : vector<64x128xf32>
    %cst_16 = arith.constant 0.000000e+00 : f32
    %21 = vector.broadcast %cst_16 : f32 to vector<64x128xf32>
    %22 = arith.maximumf %20, %21 : vector<64x128xf32>
    %c0_17 = arith.constant 0 : index
    %c0_18 = arith.constant 0 : index
    %23 = vector.load %arg5[%c0_17, %c0_18] : memref<64x128xf32, #tpu.memory_space<vmem>>, vector<64x128xf32>
    tpu.vector_store %arg5[%c0_17, %c0_18], %22 {strides = array<i32>} : memref<64x128xf32, #tpu.memory_space<vmem>>, vector<64x128xf32>,
    %c0_19 = arith.constant 0 : index
    %c0_20 = arith.constant 0 : index
    %24 = tpu.strided_load %arg5[%c0_19, %c0_20] {strides = array<i32: 2, 1>} : memref<64x128xf32, #tpu.memory_space<vmem>>, vector<32x128xf32>
    %c1_21 = arith.constant 1 : index
    %c0_22 = arith.constant 0 : index
    %25 = tpu.strided_load %arg5[%c1_21, %c0_22] {strides = array<i32: 2, 1>} : memref<64x128xf32, #tpu.memory_space<vmem>>, vector<32x128xf32>
    %cst_23 = arith.constant 0.000000e+00 : f32
    %26 = vector.broadcast %cst_23 : f32 to vector<1x128xf32>
    %27 = vector.extract_strided_slice %25 {offsets = [0, 0], sizes = [15, 128], strides = [1, 1]} : vector<32x128xf32> to vector<15x128xf32>
    %cst_24 = arith.constant 0.000000e+00 : f32
    %28 = vector.broadcast %cst_24 : f32 to vector<1x128xf32>
    %29 = vector.extract_strided_slice %25 {offsets = [16, 0], sizes = [15, 128], strides = [1, 1]} : vector<32x128xf32> to vector<15x128xf32>
    %30 = tpu.concatenate %26, %27, %28, %29 in 0 : vector<1x128xf32>, vector<15x128xf32>, vector<1x128xf32>, vector<15x128xf32> -> vector<32x128xf32>
    %c3 = arith.constant 3 : index
    %c0_25 = arith.constant 0 : index
    %c0_26 = arith.constant 0 : index
    %31 = vector.load %arg1[%c3, %c0_25, %c0_26] : memref<15x128x128xf32, #tpu.memory_space<vmem>>, vector<1x128x128xf32>
    %32 = vector.shape_cast %31 : vector<1x128x128xf32> to vector<128x128xf32>
    %c4 = arith.constant 4 : index
    %c0_27 = arith.constant 0 : index
    %c0_28 = arith.constant 0 : index
    %33 = vector.load %arg1[%c4, %c0_27, %c0_28] : memref<15x128x128xf32, #tpu.memory_space<vmem>>, vector<1x128x128xf32>
    %34 = vector.shape_cast %33 : vector<1x128x128xf32> to vector<128x128xf32>
    %c5 = arith.constant 5 : index
    %c0_29 = arith.constant 0 : index
    %c0_30 = arith.constant 0 : index
    %35 = vector.load %arg1[%c5, %c0_29, %c0_30] : memref<15x128x128xf32, #tpu.memory_space<vmem>>, vector<1x128x128xf32>
    %36 = vector.shape_cast %35 : vector<1x128x128xf32> to vector<128x128xf32>
    %cst_31 = arith.constant dense<0.000000e+00> : vector<32x128xf32>
    %37 = tpu.matmul %30, %32, %cst_31 {dimension_numbers = #tpu.dot_dimension_numbers<[1], [0], [0], [1], [0, 0, 1, 1], [], []>} : vector<32x128xf32>, vector<128x128xf32>, vector<32x128xf32> -> vector<32x128xf32>
    %cst_32 = arith.constant dense<0.000000e+00> : vector<32x128xf32>
    %38 = tpu.matmul %24, %34, %cst_32 {dimension_numbers = #tpu.dot_dimension_numbers<[1], [0], [0], [1], [0, 0, 1, 1], [], []>} : vector<32x128xf32>, vector<128x128xf32>, vector<32x128xf32> -> vector<32x128xf32>
    %39 = arith.addf %37, %38 : vector<32x128xf32>
    %cst_33 = arith.constant dense<0.000000e+00> : vector<32x128xf32>
    %40 = tpu.matmul %25, %36, %cst_33 {dimension_numbers = #tpu.dot_dimension_numbers<[1], [0], [0], [1], [0, 0, 1, 1], [], []>} : vector<32x128xf32>, vector<128x128xf32>, vector<32x128xf32> -> vector<32x128xf32>
    %41 = arith.addf %39, %40 : vector<32x128xf32>
    %c1_34 = arith.constant 1 : index
    %c0_35 = arith.constant 0 : index
    %42 = vector.load %arg2[%c1_34, %c0_35] : memref<5x128xf32, #tpu.memory_space<vmem>>, vector<1x128xf32>
    %43 = vector.broadcast %42 : vector<1x128xf32> to vector<32x128xf32>
    %44 = arith.addf %41, %43 : vector<32x128xf32>
    %cst_36 = arith.constant 0.000000e+00 : f32
    %45 = vector.broadcast %cst_36 : f32 to vector<32x128xf32>
    %46 = arith.maximumf %44, %45 : vector<32x128xf32>
    %c0_37 = arith.constant 0 : index
    %c0_38 = arith.constant 0 : index
    %47 = vector.load %arg5[%c0_37, %c0_38] : memref<64x128xf32, #tpu.memory_space<vmem>>, vector<32x128xf32>
    tpu.vector_store %arg5[%c0_37, %c0_38], %46 {strides = array<i32>} : memref<64x128xf32, #tpu.memory_space<vmem>>, vector<32x128xf32>,
    %c0_39 = arith.constant 0 : index
    %c0_40 = arith.constant 0 : index
    %48 = tpu.strided_load %arg5[%c0_39, %c0_40] {strides = array<i32: 2, 1>} : memref<64x128xf32, #tpu.memory_space<vmem>>, vector<16x128xf32>
    %c1_41 = arith.constant 1 : index
    %c0_42 = arith.constant 0 : index
    %49 = tpu.strided_load %arg5[%c1_41, %c0_42] {strides = array<i32: 2, 1>} : memref<64x128xf32, #tpu.memory_space<vmem>>, vector<16x128xf32>
    %cst_43 = arith.constant 0.000000e+00 : f32
    %50 = vector.broadcast %cst_43 : f32 to vector<1x128xf32>
    %51 = vector.extract_strided_slice %49 {offsets = [0, 0], sizes = [7, 128], strides = [1, 1]} : vector<16x128xf32> to vector<7x128xf32>
    %cst_44 = arith.constant 0.000000e+00 : f32
    %52 = vector.broadcast %cst_44 : f32 to vector<1x128xf32>
    %53 = vector.extract_strided_slice %49 {offsets = [8, 0], sizes = [7, 128], strides = [1, 1]} : vector<16x128xf32> to vector<7x128xf32>
    %54 = tpu.concatenate %50, %51, %52, %53 in 0 : vector<1x128xf32>, vector<7x128xf32>, vector<1x128xf32>, vector<7x128xf32> -> vector<16x128xf32>
    %c6 = arith.constant 6 : index
    %c0_45 = arith.constant 0 : index
    %c0_46 = arith.constant 0 : index
    %55 = vector.load %arg1[%c6, %c0_45, %c0_46] : memref<15x128x128xf32, #tpu.memory_space<vmem>>, vector<1x128x128xf32>
    %56 = vector.shape_cast %55 : vector<1x128x128xf32> to vector<128x128xf32>
    %c7 = arith.constant 7 : index
    %c0_47 = arith.constant 0 : index
    %c0_48 = arith.constant 0 : index
    %57 = vector.load %arg1[%c7, %c0_47, %c0_48] : memref<15x128x128xf32, #tpu.memory_space<vmem>>, vector<1x128x128xf32>
    %58 = vector.shape_cast %57 : vector<1x128x128xf32> to vector<128x128xf32>
    %c8 = arith.constant 8 : index
    %c0_49 = arith.constant 0 : index
    %c0_50 = arith.constant 0 : index
    %59 = vector.load %arg1[%c8, %c0_49, %c0_50] : memref<15x128x128xf32, #tpu.memory_space<vmem>>, vector<1x128x128xf32>
    %60 = vector.shape_cast %59 : vector<1x128x128xf32> to vector<128x128xf32>
    %cst_51 = arith.constant dense<0.000000e+00> : vector<16x128xf32>
    %61 = tpu.matmul %54, %56, %cst_51 {dimension_numbers = #tpu.dot_dimension_numbers<[1], [0], [0], [1], [0, 0, 1, 1], [], []>} : vector<16x128xf32>, vector<128x128xf32>, vector<16x128xf32> -> vector<16x128xf32>
    %cst_52 = arith.constant dense<0.000000e+00> : vector<16x128xf32>
    %62 = tpu.matmul %48, %58, %cst_52 {dimension_numbers = #tpu.dot_dimension_numbers<[1], [0], [0], [1], [0, 0, 1, 1], [], []>} : vector<16x128xf32>, vector<128x128xf32>, vector<16x128xf32> -> vector<16x128xf32>
    %63 = arith.addf %61, %62 : vector<16x128xf32>
    %cst_53 = arith.constant dense<0.000000e+00> : vector<16x128xf32>
    %64 = tpu.matmul %49, %60, %cst_53 {dimension_numbers = #tpu.dot_dimension_numbers<[1], [0], [0], [1], [0, 0, 1, 1], [], []>} : vector<16x128xf32>, vector<128x128xf32>, vector<16x128xf32> -> vector<16x128xf32>
    %65 = arith.addf %63, %64 : vector<16x128xf32>
    %c2_54 = arith.constant 2 : index
    %c0_55 = arith.constant 0 : index
    %66 = vector.load %arg2[%c2_54, %c0_55] : memref<5x128xf32, #tpu.memory_space<vmem>>, vector<1x128xf32>
    %67 = vector.broadcast %66 : vector<1x128xf32> to vector<16x128xf32>
    %68 = arith.addf %65, %67 : vector<16x128xf32>
    %cst_56 = arith.constant 0.000000e+00 : f32
    %69 = vector.broadcast %cst_56 : f32 to vector<16x128xf32>
    %70 = arith.maximumf %68, %69 : vector<16x128xf32>
    %c0_57 = arith.constant 0 : index
    %c0_58 = arith.constant 0 : index
    %71 = vector.load %arg5[%c0_57, %c0_58] : memref<64x128xf32, #tpu.memory_space<vmem>>, vector<16x128xf32>
    tpu.vector_store %arg5[%c0_57, %c0_58], %70 {strides = array<i32>} : memref<64x128xf32, #tpu.memory_space<vmem>>, vector<16x128xf32>,
    %c0_59 = arith.constant 0 : index
    %c0_60 = arith.constant 0 : index
    %72 = tpu.strided_load %arg5[%c0_59, %c0_60] {strides = array<i32: 2, 1>} : memref<64x128xf32, #tpu.memory_space<vmem>>, vector<8x128xf32>
    %c1_61 = arith.constant 1 : index
    %c0_62 = arith.constant 0 : index
    %73 = tpu.strided_load %arg5[%c1_61, %c0_62] {strides = array<i32: 2, 1>} : memref<64x128xf32, #tpu.memory_space<vmem>>, vector<8x128xf32>
    %cst_63 = arith.constant 0.000000e+00 : f32
    %74 = vector.broadcast %cst_63 : f32 to vector<1x128xf32>
    %75 = vector.extract_strided_slice %73 {offsets = [0, 0], sizes = [3, 128], strides = [1, 1]} : vector<8x128xf32> to vector<3x128xf32>
    %cst_64 = arith.constant 0.000000e+00 : f32
    %76 = vector.broadcast %cst_64 : f32 to vector<1x128xf32>
    %77 = vector.extract_strided_slice %73 {offsets = [4, 0], sizes = [3, 128], strides = [1, 1]} : vector<8x128xf32> to vector<3x128xf32>
    %78 = tpu.concatenate %74, %75, %76, %77 in 0 : vector<1x128xf32>, vector<3x128xf32>, vector<1x128xf32>, vector<3x128xf32> -> vector<8x128xf32>
    %c9 = arith.constant 9 : index
    %c0_65 = arith.constant 0 : index
    %c0_66 = arith.constant 0 : index
    %79 = vector.load %arg1[%c9, %c0_65, %c0_66] : memref<15x128x128xf32, #tpu.memory_space<vmem>>, vector<1x128x128xf32>
    %80 = vector.shape_cast %79 : vector<1x128x128xf32> to vector<128x128xf32>
    %c10 = arith.constant 10 : index
    %c0_67 = arith.constant 0 : index
    %c0_68 = arith.constant 0 : index
    %81 = vector.load %arg1[%c10, %c0_67, %c0_68] : memref<15x128x128xf32, #tpu.memory_space<vmem>>, vector<1x128x128xf32>
    %82 = vector.shape_cast %81 : vector<1x128x128xf32> to vector<128x128xf32>
    %c11 = arith.constant 11 : index
    %c0_69 = arith.constant 0 : index
    %c0_70 = arith.constant 0 : index
    %83 = vector.load %arg1[%c11, %c0_69, %c0_70] : memref<15x128x128xf32, #tpu.memory_space<vmem>>, vector<1x128x128xf32>
    %84 = vector.shape_cast %83 : vector<1x128x128xf32> to vector<128x128xf32>
    %cst_71 = arith.constant dense<0.000000e+00> : vector<8x128xf32>
    %85 = tpu.matmul %78, %80, %cst_71 {dimension_numbers = #tpu.dot_dimension_numbers<[1], [0], [0], [1], [0, 0, 1, 1], [], []>} : vector<8x128xf32>, vector<128x128xf32>, vector<8x128xf32> -> vector<8x128xf32>
    %cst_72 = arith.constant dense<0.000000e+00> : vector<8x128xf32>
    %86 = tpu.matmul %72, %82, %cst_72 {dimension_numbers = #tpu.dot_dimension_numbers<[1], [0], [0], [1], [0, 0, 1, 1], [], []>} : vector<8x128xf32>, vector<128x128xf32>, vector<8x128xf32> -> vector<8x128xf32>
    %87 = arith.addf %85, %86 : vector<8x128xf32>
    %cst_73 = arith.constant dense<0.000000e+00> : vector<8x128xf32>
    %88 = tpu.matmul %73, %84, %cst_73 {dimension_numbers = #tpu.dot_dimension_numbers<[1], [0], [0], [1], [0, 0, 1, 1], [], []>} : vector<8x128xf32>, vector<128x128xf32>, vector<8x128xf32> -> vector<8x128xf32>
    %89 = arith.addf %87, %88 : vector<8x128xf32>
    %c3_74 = arith.constant 3 : index
    %c0_75 = arith.constant 0 : index
    %90 = vector.load %arg2[%c3_74, %c0_75] : memref<5x128xf32, #tpu.memory_space<vmem>>, vector<1x128xf32>
    %91 = vector.broadcast %90 : vector<1x128xf32> to vector<8x128xf32>
    %92 = arith.addf %89, %91 : vector<8x128xf32>
    %cst_76 = arith.constant 0.000000e+00 : f32
    %93 = vector.broadcast %cst_76 : f32 to vector<8x128xf32>
    %94 = arith.maximumf %92, %93 : vector<8x128xf32>
    %c0_77 = arith.constant 0 : index
    %c0_78 = arith.constant 0 : index
    %95 = vector.load %arg5[%c0_77, %c0_78] : memref<64x128xf32, #tpu.memory_space<vmem>>, vector<8x128xf32>
    tpu.vector_store %arg5[%c0_77, %c0_78], %94 {strides = array<i32>} : memref<64x128xf32, #tpu.memory_space<vmem>>, vector<8x128xf32>,
    %c0_79 = arith.constant 0 : index
    %c0_80 = arith.constant 0 : index
    %96 = tpu.strided_load %arg5[%c0_79, %c0_80] {strides = array<i32: 2, 1>} : memref<64x128xf32, #tpu.memory_space<vmem>>, vector<4x128xf32>
    %c1_81 = arith.constant 1 : index
    %c0_82 = arith.constant 0 : index
    %97 = tpu.strided_load %arg5[%c1_81, %c0_82] {strides = array<i32: 2, 1>} : memref<64x128xf32, #tpu.memory_space<vmem>>, vector<4x128xf32>
    %cst_83 = arith.constant 0.000000e+00 : f32
    %98 = vector.broadcast %cst_83 : f32 to vector<1x128xf32>
    %99 = vector.extract_strided_slice %97 {offsets = [0, 0], sizes = [1, 128], strides = [1, 1]} : vector<4x128xf32> to vector<1x128xf32>
    %cst_84 = arith.constant 0.000000e+00 : f32
    %100 = vector.broadcast %cst_84 : f32 to vector<1x128xf32>
    %101 = vector.extract_strided_slice %97 {offsets = [2, 0], sizes = [1, 128], strides = [1, 1]} : vector<4x128xf32> to vector<1x128xf32>
    %102 = tpu.concatenate %98, %99, %100, %101 in 0 : vector<1x128xf32>, vector<1x128xf32>, vector<1x128xf32>, vector<1x128xf32> -> vector<4x128xf32>
    %c12 = arith.constant 12 : index
    %c0_85 = arith.constant 0 : index
    %c0_86 = arith.constant 0 : index
    %103 = vector.load %arg1[%c12, %c0_85, %c0_86] : memref<15x128x128xf32, #tpu.memory_space<vmem>>, vector<1x128x128xf32>
    %104 = vector.shape_cast %103 : vector<1x128x128xf32> to vector<128x128xf32>
    %c13 = arith.constant 13 : index
    %c0_87 = arith.constant 0 : index
    %c0_88 = arith.constant 0 : index
    %105 = vector.load %arg1[%c13, %c0_87, %c0_88] : memref<15x128x128xf32, #tpu.memory_space<vmem>>, vector<1x128x128xf32>
    %106 = vector.shape_cast %105 : vector<1x128x128xf32> to vector<128x128xf32>
    %c14 = arith.constant 14 : index
    %c0_89 = arith.constant 0 : index
    %c0_90 = arith.constant 0 : index
    %107 = vector.load %arg1[%c14, %c0_89, %c0_90] : memref<15x128x128xf32, #tpu.memory_space<vmem>>, vector<1x128x128xf32>
    %108 = vector.shape_cast %107 : vector<1x128x128xf32> to vector<128x128xf32>
    %cst_91 = arith.constant dense<0.000000e+00> : vector<4x128xf32>
    %109 = tpu.matmul %102, %104, %cst_91 {dimension_numbers = #tpu.dot_dimension_numbers<[1], [0], [0], [1], [0, 0, 1, 1], [], []>} : vector<4x128xf32>, vector<128x128xf32>, vector<4x128xf32> -> vector<4x128xf32>
    %cst_92 = arith.constant dense<0.000000e+00> : vector<4x128xf32>
    %110 = tpu.matmul %96, %106, %cst_92 {dimension_numbers = #tpu.dot_dimension_numbers<[1], [0], [0], [1], [0, 0, 1, 1], [], []>} : vector<4x128xf32>, vector<128x128xf32>, vector<4x128xf32> -> vector<4x128xf32>
    %111 = arith.addf %109, %110 : vector<4x128xf32>
    %cst_93 = arith.constant dense<0.000000e+00> : vector<4x128xf32>
    %112 = tpu.matmul %97, %108, %cst_93 {dimension_numbers = #tpu.dot_dimension_numbers<[1], [0], [0], [1], [0, 0, 1, 1], [], []>} : vector<4x128xf32>, vector<128x128xf32>, vector<4x128xf32> -> vector<4x128xf32>
    %113 = arith.addf %111, %112 : vector<4x128xf32>
    %c4_94 = arith.constant 4 : index
    %c0_95 = arith.constant 0 : index
    %114 = vector.load %arg2[%c4_94, %c0_95] : memref<5x128xf32, #tpu.memory_space<vmem>>, vector<1x128xf32>
    %115 = vector.broadcast %114 : vector<1x128xf32> to vector<4x128xf32>
    %116 = arith.addf %113, %115 : vector<4x128xf32>
    %c0_96 = arith.constant 0 : index
    %c0_97 = arith.constant 0 : index
    %117 = vector.load %arg3[%c0_96, %c0_97] : memref<4x128xf32, #tpu.memory_space<vmem>>, vector<4x128xf32>
    tpu.vector_store %arg3[%c0_96, %c0_97], %116 {strides = array<i32>} : memref<4x128xf32, #tpu.memory_space<vmem>>, vector<4x128xf32>,
    %118 = vector.extract_strided_slice %116 {offsets = [0, 0], sizes = [1, 128], strides = [1, 1]} : vector<4x128xf32> to vector<1x128xf32>
    %119 = vector.extract_strided_slice %116 {offsets = [1, 0], sizes = [1, 128], strides = [1, 1]} : vector<4x128xf32> to vector<1x128xf32>
    %120 = arith.addf %118, %119 : vector<1x128xf32>
    %121 = vector.extract_strided_slice %116 {offsets = [2, 0], sizes = [1, 128], strides = [1, 1]} : vector<4x128xf32> to vector<1x128xf32>
    %122 = vector.extract_strided_slice %116 {offsets = [3, 0], sizes = [1, 128], strides = [1, 1]} : vector<4x128xf32> to vector<1x128xf32>
    %123 = arith.addf %121, %122 : vector<1x128xf32>
    %124 = tpu.concatenate %120, %123 in 0 : vector<1x128xf32>, vector<1x128xf32> -> vector<2x128xf32>
    %cst_98 = arith.constant 5.000000e-01 : f32
    %125 = vector.broadcast %cst_98 : f32 to vector<2x128xf32>
    %126 = arith.mulf %124, %125 : vector<2x128xf32>
    %127 = arith.mulf %126, %126 : vector<2x128xf32>
    %cst_99 = arith.constant dense<0.000000e+00> : vector<2xf32>
    %128 = vector.multi_reduction <add>, %127, %cst_99 [1] : vector<2x128xf32> to vector<2xf32>
    %129 = vector.shape_cast %128 : vector<2xf32> to vector<2x1xf32>
    %cst_100 = arith.constant 1.000000e-24 : f32
    %130 = vector.broadcast %cst_100 : f32 to vector<2x1xf32>
    %131 = arith.maximumf %129, %130 : vector<2x1xf32>
    %132 = math.rsqrt %131 : vector<2x1xf32>
    %133 = vector.broadcast %132 : vector<2x1xf32> to vector<2x128xf32>
    %134 = arith.mulf %126, %133 : vector<2x128xf32>
    %c0_101 = arith.constant 0 : index
    %c0_102 = arith.constant 0 : index
    %135 = vector.load %arg4[%c0_101, %c0_102] : memref<2x128xf32, #tpu.memory_space<vmem>>, vector<2x128xf32>
    tpu.vector_store %arg4[%c0_101, %c0_102], %134 {strides = array<i32>} : memref<2x128xf32, #tpu.memory_space<vmem>>, vector<2x128xf32>,
    return
  }
}

</mosaic_0001>

<bundles_post_ra>
// kernel: sf2f_encoder_forward.1
= control target key start
LH: loop header
LB: loop body
LE: loop exit
PB: predicated region body
PF: predicated region fallthrough
CT: control target
= control target key end

     0   :  { %10 = vsyncpa [#allocation4], 0  ;;  %s2997_s0 = inlined_call_operand.vmem [shape: f32[128,128], index: 0, kind: input, shape index: {}]   ;;  %s2998_s1 = inlined_call_operand.hbm [shape: f32[15,128,128], index: 1, kind: input, shape index: {}]   ;;  %s2999_s2 = inlined_call_operand.vmem [shape: f32[5,128], index: 2, kind: input, shape index: {}]   ;;  %s3000_s3 = inlined_call_operand.hbm [shape: f32[4,128], index: 3, kind: output, shape index: {0}]   ;;  %s3001_s4 = inlined_call_operand.hbm [shape: f32[2,128], index: 4, kind: output, shape index: {1}]  }
   0x1   :  { %11 = vsyncpa [#allocation5], 0 }
   0x2   :  { %12 = vsyncpa [#allocation8], 0  ;;  %s2719_s15 = smov [#allocation3]  }
   0x3   :  { %s20_s16 = sshll.u32 %s2719_s15, 4  ;;  %s21_s16 = int_to_ptr.vmem [resolvable:$true] %s20_s16 }
   0x4   :  { %s2661_s17 = scalar_lea.vmem %s21_s16, 30720  ;;  %p2666_p1 = scmp.lt.s32.totalorder %s21_s16, %s21_s16 }
   0x5   :  { %p2662_p0 = scmp.ne.s32.totalorder %s21_s16, %s2661_s17  ;;  %p2667_p2 = scmp.lt.s32.totalorder %s2661_s17, %s2661_s17 }
   0x7   :  { %p2668_p3 = por %p2667_p2, %p2666_p1 }
   0x9   :  { %p2669_p4 = pnand %p2668_p3, %p2662_p0 }
   0xb   :  { %2672 = shalt.err (!%p2669_p4)
}
   0xc   :  { %s2720_s18 = smov 128   ;;  %s2721_s19 = smov 8  }
   0xd   :  { %26 = dma.hbm_to_vmem [thread:$0]  %s2998_s1, 30720, %s21_s16, [#allocation4], %s2720_s18, %s2720_s18, %s2721_s19  }
   0xe   :  { %2713 = dma.done.wait [#allocation4], 30720  }
   0xf   :  { %2714 = vsyncadd [#allocation4], 4294936576  ;;  %v128_v0 = vld [vmem:[#allocation3 + $0xf8] sm:$0xff]  ;;  %v127_v2 = vld [vmem:[#allocation3 + $0xf0] sm:$0xff]  ;;  %vm67_vm0 = vcmask 1040384   ;;  %vm2723_vm2 = vmmov 0  }
  0x10   :  { %v111_v1 = vld [vmem:[#allocation3 + $0x78] sm:$0xff]  ;;  %2083 = vmatprep.subr.mxu0 %v128_v0  ;;  %v110_v3 = vld [vmem:[#allocation3 + $0x70] sm:$0xff]  ;;  %v126_v4 = vld [vmem:[#allocation3 + $0xe8] sm:$0xff]  ;;  %vm1164_vm3 = vcmask 1043456   ;;  %vm1166_vm4 = vcmask 1044480   ;;  %vm1444_vm5 = vcmask 1041408  }
  0x11   :  { %2127 = vmatprep.subr.mxu1 %v111_v1  ;;  %2084 = vmatpush3.msra.mxu0 %v128_v0  ;;  %v109_v5 = vld [vmem:[#allocation3 + $0x68] sm:$0xff]  ;;  %v125_v6 = vld [vmem:[#allocation3 + $0xe0] sm:$0xff]  ;;  %v124_v8 = vld [vmem:[#allocation3 + $0xd8] sm:$0xff]  ;;  %vm1446_vm6 = vcmask 1042432   ;;  %s2724_s9 = smov [#allocation6]  }
  0x12   :  { %2128 = vmatpush3.msra.mxu1 %v111_v1  ;;  %2085 = vmatprep.subr.mxu0 %v127_v2  ;;  %v108_v7 = vld [vmem:[#allocation3 + $0x60] sm:$0xff]  ;;  %v107_v9 = vld [vmem:[#allocation3 + $0x58] sm:$0xff]  ;;  %v123_v10 = vld [vmem:[#allocation3 + $0xd0] sm:$0xff]  ;;  %s1740_s10 = sshll.u32 %s2724_s9, 4  ;;  %s1741_s10 = int_to_ptr.vmem [resolvable:$true] %s1740_s10 }
  0x13   :  { %2129 = vmatprep.subr.mxu1 %v110_v3  ;;  %2086 = vmatpush3.msra.mxu0 %v127_v2  ;;  %v106_v11 = vld [vmem:[#allocation3 + $0x50] sm:$0xff]  ;;  %v122_v12 = vld [vmem:[#allocation3 + $0xc8] sm:$0xff]  ;;  %v121_v14 = vld [vmem:[#allocation3 + $0xc0] sm:$0xff]  ;;  %s2673_s11 = scalar_lea.vmem %s1741_s10, 64  ;;  %p2678_p6 = scmp.lt.s32.totalorder %s1741_s10, %s1741_s10 }
  0x14   :  { %2130 = vmatpush3.msra.mxu1 %v110_v3  ;;  %2087 = vmatprep.subr.mxu0 %v126_v4  ;;  %v105_v13 = vld [vmem:[#allocation3 + $0x48] sm:$0xff]  ;;  %v104_v15 = vld [vmem:[#allocation3 + $0x40] sm:$0xff]  ;;  %v120_v16 = vld [vmem:[#allocation3 + $0xb8] sm:$0xff]  ;;  %p2674_p5 = scmp.ne.s32.totalorder %s1741_s10, %s2673_s11  ;;  %p2679_p7 = scmp.lt.s32.totalorder %s2673_s11, %s2673_s11 }
  0x15   :  { %2131 = vmatprep.subr.mxu1 %v109_v5  ;;  %2088 = vmatpush3.msra.mxu0 %v126_v4  ;;  %v103_v17 = vld [vmem:[#allocation3 + $0x38] sm:$0xff]  ;;  %v119_v18 = vld [vmem:[#allocation3 + $0xb0] sm:$0xff]  ;;  %v118_v20 = vld [vmem:[#allocation3 + $0xa8] sm:$0xff] }
  0x16   :  { %2132 = vmatpush3.msra.mxu1 %v109_v5  ;;  %2089 = vmatprep.subr.mxu0 %v125_v6  ;;  %v102_v19 = vld [vmem:[#allocation3 + $0x30] sm:$0xff]  ;;  %v101_v21 = vld [vmem:[#allocation3 + $0x28] sm:$0xff]  ;;  %v117_v22 = vld [vmem:[#allocation3 + $0xa0] sm:$0xff]  ;;  %p2680_p8 = por %p2679_p7, %p2678_p6 }
  0x17   :  { %2133 = vmatprep.subr.mxu1 %v108_v7  ;;  %2090 = vmatpush3.msra.mxu0 %v125_v6  ;;  %v100_v23 = vld [vmem:[#allocation3 + $0x20] sm:$0xff]  ;;  %v116_v24 = vld [vmem:[#allocation3 + $0x98] sm:$0xff]  ;;  %v115_v26 = vld [vmem:[#allocation3 + $0x90] sm:$0xff] }
  0x18   :  { %2134 = vmatpush3.msra.mxu1 %v108_v7  ;;  %2091 = vmatprep.subr.mxu0 %v124_v8  ;;  %v99_v25 = vld [vmem:[#allocation3 + $0x18] sm:$0xff]  ;;  %v98_v27 = vld [vmem:[#allocation3 + $0x10] sm:$0xff]  ;;  %v2757_v28 = vld [vmem:[%s2997_s0 + $0x1] ss:$2 sm:$0xff]  ;;  %p2681_p9 = pnand %p2680_p8, %p2674_p5 }
  0x19   :  { %2135 = vmatprep.subr.mxu1 %v107_v9  ;;  %2092 = vmatpush3.msra.mxu0 %v124_v8  ;;  %v2762_v29 = vld [vmem:[%s2997_s0 + $0x11] ss:$2 sm:$0xff]  ;;  %v114_v30 = vld [vmem:[#allocation3 + $0x88] sm:$0xff]  ;;  %v68_v33 = vrot.slane %v2757_v28, 7  ;;  %v113_v35 = vld [vmem:[#allocation3 + $0x80] sm:$0xff] }
  0x1a   :  { %2136 = vmatpush3.msra.mxu1 %v107_v9  ;;  %2093 = vmatprep.subr.mxu0 %v123_v10  ;;  %v97_v31 = vld [vmem:[#allocation3 + $0x8] sm:$0xff]  ;;  %v69_v34 = vrot.slane %v2762_v29, 7  ;;  %v96_v36 = vld [vmem:[#allocation3] sm:$0xff]  ;;  %v2774_v37 = vld [vmem:[%s2997_s0 + $0x31] ss:$2 sm:$0xff] }
  0x1b   :  { %2137 = vmatprep.subr.mxu1 %v106_v11  ;;  %2094 = vmatpush3.msra.mxu0 %v123_v10  ;;  %v2767_v32 = vld [vmem:[%s2997_s0 + $0x21] ss:$2 sm:$0xff]  ;;  %v32_v38 = vld [vmem:[%s2997_s0] ss:$2 sm:$0xff]  ;;  %vm2781_vm1 = vmneg %vm67_vm0  ;;  %v73_v44 = vrot.slane %v2774_v37, 7 }
  0x1c   :  { %2138 = vmatpush3.msra.mxu1 %v106_v11  ;;  %2095 = vmatprep.subr.mxu0 %v122_v12  ;;  %v71_v39 = vrot.slane %v2767_v32, 7  ;;  %v1763_v41 = vld [vmem:[%s2997_s0 + $0x10] ss:$2 sm:$0xff]  ;;  %v70_v42 = vsel %vm67_vm0, %v68_v33, %v69_v34  ;;  %v1764_v45 = vld [vmem:[%s2997_s0 + $0x20] ss:$2 sm:$0xff] }
  0x1d   :  { %2139 = vmatprep.subr.mxu1 %v105_v13  ;;  %2096 = vmatpush3.msra.mxu0 %v122_v12  ;;  %v145_v43 = vld [vmem:[#allocation3 + $0x178] sm:$0xff]  ;;  %v2796_v46 = vld [vmem:[%s2997_s0 + $0x41] ss:$2 sm:$0xff]  ;;  %v144_v49 = vld [vmem:[#allocation3 + $0x170] sm:$0xff] }
  0x1e   :  { %2140 = vmatpush3.msra.mxu1 %v105_v13  ;;  %2097 = vmatprep.subr.mxu0 %v121_v14  ;;  %v2801_v47 = vld [vmem:[%s2997_s0 + $0x51] ss:$2 sm:$0xff]  ;;  %v72_v48 = vsel %vm67_vm0, %v69_v34, %v71_v39  ;;  %v74_v50 = vsel %vm67_vm0, %v71_v39, %v73_v44  ;;  %v83_v51 = vrot.slane %v2796_v46, 7  ;;  %v2812_v53 = vld [vmem:[%s2997_s0 + $0x61] ss:$2 sm:$0xff] }
  0x1f   :  { %2141 = vmatprep.subr.mxu1 %v104_v15  ;;  %2098 = vmatpush3.msra.mxu0 %v121_v14  ;;  %v84_v52 = vrot.slane %v2801_v47, 7  ;;  %v143_v54 = vld [vmem:[#allocation3 + $0x168] sm:$0xff]  ;;  %v1765_v55 = vld [vmem:[%s2997_s0 + $0x30] ss:$2 sm:$0xff]  ;;  %v2820_v56 = vld [vmem:[%s2997_s0 + $0x71] ss:$2 sm:$0xff] }
  0x20   :  { %2142 = vmatpush3.msra.mxu1 %v104_v15  ;;  %2099 = vmatprep.subr.mxu0 %v120_v16  ;;  %v1766_v57 = vld [vmem:[%s2997_s0 + $0x40] ss:$2 sm:$0xff]  ;;  %v86_v59 = vrot.slane %v2812_v53, 7  ;;  %v88_v61 = vrot.slane %v2820_v56, 7  ;;  %v141_v62 = vld [vmem:[#allocation3 + $0x158] sm:$0xff]  ;;  %v140_v1 = vld [vmem:[#allocation3 + $0x150] sm:$0xff] }
  0x21   :  { %2143 = vmatprep.subr.mxu1 %v103_v17  ;;  %2100 = vmatpush3.msra.mxu0 %v120_v16  ;;  %v142_v58 = vld [vmem:[#allocation3 + $0x160] sm:$0xff]  ;;  %v85_v60 = vsel %vm67_vm0, %v83_v51, %v84_v52  ;;  %v1767_v63 = vld [vmem:[%s2997_s0 + $0x50] ss:$2 sm:$0xff]  ;;  %v139_v4 = vld [vmem:[#allocation3 + $0x148] sm:$0xff] }
  0x22   :  { %2144 = vmatpush3.msra.mxu1 %v103_v17  ;;  %2101 = vmatprep.subr.mxu0 %v119_v18  ;;  %v1768_v0 = vld [vmem:[%s2997_s0 + $0x60] ss:$2 sm:$0xff]  ;;  %v87_v2 = vsel %vm67_vm0, %v84_v52, %v86_v59  ;;  %v89_v3 = vsel %vm67_vm0, %v86_v59, %v88_v61  ;;  %v1769_v5 = vld [vmem:[%s2997_s0 + $0x70] ss:$2 sm:$0xff] }
  0x23   :  { %2145 = vmatprep.subr.mxu1 %v102_v19  ;;  %2102 = vmatpush3.msra.mxu0 %v119_v18  ;;  %v138_v6 = vld [vmem:[#allocation3 + $0x140] sm:$0xff]  ;;  %v137_v7 = vld [vmem:[#allocation3 + $0x138] sm:$0xff]  ;;  %v136_v8 = vld [vmem:[#allocation3 + $0x130] sm:$0xff] }
  0x24   :  { %2146 = vmatpush3.msra.mxu1 %v102_v19  ;;  %2103 = vmatprep.subr.mxu0 %v118_v20  ;;  %v135_v9 = vld [vmem:[#allocation3 + $0x128] sm:$0xff]  ;;  %v134_v10 = vld [vmem:[#allocation3 + $0x120] sm:$0xff]  ;;  %v133_v11 = vld [vmem:[#allocation3 + $0x118] sm:$0xff] }
  0x25   :  { %2147 = vmatprep.subr.mxu1 %v101_v21  ;;  %2104 = vmatpush3.msra.mxu0 %v118_v20  ;;  %v132_v12 = vld [vmem:[#allocation3 + $0x110] sm:$0xff]  ;;  %v131_v13 = vld [vmem:[#allocation3 + $0x108] sm:$0xff]  ;;  %v130_v14 = vld [vmem:[#allocation3 + $0x100] sm:$0xff] }
  0x26   :  { %2148 = vmatpush3.msra.mxu1 %v101_v21  ;;  %2105 = vmatprep.subr.mxu0 %v117_v22  ;;  %v562_v15 = vld [vmem:[#allocation3 + $0x278] sm:$0xff]  ;;  %v561_v16 = vld [vmem:[#allocation3 + $0x270] sm:$0xff]  ;;  %v560_v17 = vld [vmem:[#allocation3 + $0x268] sm:$0xff] }
  0x27   :  { %2149 = vmatprep.subr.mxu1 %v100_v23  ;;  %2106 = vmatpush3.msra.mxu0 %v117_v22  ;;  %v545_v18 = vld [vmem:[#allocation3 + $0x1f8] sm:$0xff]  ;;  %v559_v19 = vld [vmem:[#allocation3 + $0x260] sm:$0xff]  ;;  %v544_v20 = vld [vmem:[#allocation3 + $0x1f0] sm:$0xff] }
  0x28   :  { %2150 = vmatpush3.msra.mxu1 %v100_v23  ;;  %2107 = vmatprep.subr.mxu0 %v116_v24  ;;  %v558_v21 = vld [vmem:[#allocation3 + $0x258] sm:$0xff]  ;;  %v543_v22 = vld [vmem:[#allocation3 + $0x1e8] sm:$0xff]  ;;  %v557_v23 = vld [vmem:[#allocation3 + $0x250] sm:$0xff] }
  0x29   :  { %2151 = vmatprep.subr.mxu1 %v99_v25  ;;  %2108 = vmatpush3.msra.mxu0 %v116_v24  ;;  %v542_v24 = vld [vmem:[#allocation3 + $0x1e0] sm:$0xff]  ;;  %v537_v34 = vld [vmem:[#allocation3 + $0x1b8] sm:$0xff]  ;;  %v549_v39 = vld [vmem:[#allocation3 + $0x210] sm:$0xff] }
  0x2a   :  { %2152 = vmatpush3.msra.mxu1 %v99_v25  ;;  %2109 = vmatprep.subr.mxu0 %v115_v26  ;;  %v556_v25 = vld [vmem:[#allocation3 + $0x248] sm:$0xff]  ;;  %v547_v44 = vld [vmem:[#allocation3 + $0x200] sm:$0xff]  ;;  %v910_v40 = vld [vmem:[#allocation3 + $0x430] sm:$0xff] }
  0x2b   :  { %2153 = vmatprep.subr.mxu1 %v98_v27  ;;  %2110 = vmatpush3.msra.mxu0 %v115_v26  ;;  %v541_v26 = vld [vmem:[#allocation3 + $0x1d8] sm:$0xff] }
  0x2c   :  { %2154 = vmatpush3.msra.mxu1 %v98_v27  ;;  %2111 = vmatprep.subr.mxu0 %v114_v30  ;;  %v555_v27 = vld [vmem:[#allocation3 + $0x240] sm:$0xff] }
  0x2d   :  { %2155 = vmatprep.subr.mxu1 %v97_v31  ;;  %2112 = vmatpush3.msra.mxu0 %v114_v30  ;;  %v539_v30 = vld [vmem:[#allocation3 + $0x1c8] sm:$0xff] }
  0x2e   :  { %2156 = vmatpush3.msra.mxu1 %v97_v31  ;;  %2113 = vmatprep.subr.mxu0 %v113_v35  ;;  %v553_v31 = vld [vmem:[#allocation3 + $0x230] sm:$0xff] }
  0x2f   :  { %2157 = vmatprep.subr.mxu1 %v96_v36  ;;  %2114 = vmatpush3.msra.mxu0 %v113_v35  ;;  %v551_v35 = vld [vmem:[#allocation3 + $0x220] sm:$0xff] }
  0x30   :  { %2115 = vmatprep.mubr.f32.mxu0 %v32_v38  ;;  %2158 = vmatpush3.msra.mxu1 %v96_v36  ;;  %v536_v36 = vld [vmem:[#allocation3 + $0x1b0] sm:$0xff]  ;;  %v535_v38 = vld [vmem:[#allocation3 + $0x1a8] sm:$0xff] }
  0x31   :  { %2159 = vmatprep.mubr.msk.f32.mxu1 %vm2781_vm1, %v68_v33  ;;  %2116 = vmatmul.mubr.f32.vlgmr.msra.gmra.mxu0 %v1763_v41  ;;  %v552_v33 = vld [vmem:[#allocation3 + $0x228] sm:$0xff]  ;;  %v534_v41 = vld [vmem:[#allocation3 + $0x1a0] sm:$0xff] }
  0x32   :  { %2160 = vmatmul.mubr.f32.vlgmr.msra.gmra.mxu1 %v70_v42  ;;  %2171 = vmatprep.subr.mxu0 %v145_v43  ;;  %v548_v42 = vld [vmem:[#allocation3 + $0x208] sm:$0xff] }
  0x33   :  { %2118 = vmatprep.mubr.f32.mxu0 %v1764_v45  ;;  %2172 = vmatpush3.msra.mxu0 %v145_v43  ;;  %v533_v43 = vld [vmem:[#allocation3 + $0x198] sm:$0xff]  ;;  %v532_v45 = vld [vmem:[#allocation3 + $0x190] sm:$0xff] }
  0x34   :  { %2162 = vmatprep.mubr.f32.mxu1 %v72_v48  ;;  %2173 = vmatprep.subr.mxu0 %v144_v49  ;;  %v530_v48 = vld [vmem:[#allocation3 + $0x180] sm:$0xff] }
  0x35   :  { %2174 = vmatpush3.msra.mxu0 %v144_v49  ;;  %2215 = vmatprep.subr.mxu1 %v562_v15 }
  0x36   :  { %2163 = vmatmul.mubr.f32.gmra.mxu1 %v74_v50  ;;  %2175 = vmatprep.subr.mxu0 %v143_v54 }
  0x37   :  { %2119 = vmatmul.mubr.f32.gmra.mxu0 %v1765_v55  ;;  %2165 = vmatprep.mubr.msk.f32.mxu1 %vm2781_vm1, %v83_v51 }
  0x38   :  { %2176 = vmatpush3.msra.mxu0 %v143_v54  ;;  %2121 = vmatprep.mubr.f32.mxu0 %v1766_v57 }
  0x39   :  { %2177 = vmatprep.subr.mxu0 %v142_v58  ;;  %2216 = vmatpush3.msra.mxu1 %v562_v15 }
  0x3a   :  { %2178 = vmatpush3.msra.mxu0 %v142_v58  ;;  %2166 = vmatmul.mubr.f32.gmra.mxu1 %v85_v60 }
  0x3b   :  { %2179 = vmatprep.subr.mxu0 %v141_v62  ;;  %2122 = vmatmul.mubr.f32.gmra.mxu0 %v1767_v63 }
  0x3c   :  { %2180 = vmatpush3.msra.mxu0 %v141_v62  ;;  %2124 = vmatprep.mubr.f32.mxu0 %v1768_v0  ;;  %v1782_v0 = vld [vmem:[%s2999_s2] ss:$0 sm:$0xff] }
  0x3d   :  { %2181 = vmatprep.subr.mxu0 %v140_v1  ;;  %2168 = vmatprep.mubr.f32.mxu1 %v87_v2 }
  0x3e   :  { %2182 = vmatpush3.msra.mxu0 %v140_v1  ;;  %2169 = vmatmul.mubr.f32.gmra.mxu1 %v89_v3 }
  0x3f   :  { %2183 = vmatprep.subr.mxu0 %v139_v4  ;;  %2125 = vmatmul.mubr.f32.gmra.mxu0 %v1769_v5 }
  0x40   :  { %2184 = vmatpush3.msra.mxu0 %v139_v4  ;;  %2203 = vmatprep.mubr.f32.mxu0 %v2757_v28  ;;  %v540_v28 = vld [vmem:[#allocation3 + $0x1d0] sm:$0xff] }
  0x41   :  { %2185 = vmatprep.subr.mxu0 %v138_v6  ;;  %2217 = vmatprep.subr.mxu1 %v561_v16 }
  0x42   :  { %2186 = vmatpush3.msra.mxu0 %v138_v6  ;;  %2218 = vmatpush3.msra.mxu1 %v561_v16 }
  0x43   :  { %2187 = vmatprep.subr.mxu0 %v137_v7  ;;  %2219 = vmatprep.subr.mxu1 %v560_v17 }
  0x44   :  { %2188 = vmatpush3.msra.mxu0 %v137_v7  ;;  %2220 = vmatpush3.msra.mxu1 %v560_v17 }
  0x45   :  { %2189 = vmatprep.subr.mxu0 %v136_v8  ;;  %2221 = vmatprep.subr.mxu1 %v559_v19 }
  0x46   :  { %2190 = vmatpush3.msra.mxu0 %v136_v8  ;;  %2222 = vmatpush3.msra.mxu1 %v559_v19 }
  0x47   :  { %2191 = vmatprep.subr.mxu0 %v135_v9  ;;  %2223 = vmatprep.subr.mxu1 %v558_v21 }
  0x48   :  { %2192 = vmatpush3.msra.mxu0 %v135_v9  ;;  %2224 = vmatpush3.msra.mxu1 %v558_v21 }
  0x49   :  { %2193 = vmatprep.subr.mxu0 %v134_v10  ;;  %2225 = vmatprep.subr.mxu1 %v557_v23 }
  0x4a   :  { %2194 = vmatpush3.msra.mxu0 %v134_v10  ;;  %2226 = vmatpush3.msra.mxu1 %v557_v23 }
  0x4b   :  { %2195 = vmatprep.subr.mxu0 %v133_v11  ;;  %2227 = vmatprep.subr.mxu1 %v556_v25 }
  0x4c   :  { %2196 = vmatpush3.msra.mxu0 %v133_v11  ;;  %2228 = vmatpush3.msra.mxu1 %v556_v25 }
  0x4d   :  { %2197 = vmatprep.subr.mxu0 %v132_v12  ;;  %2229 = vmatprep.subr.mxu1 %v555_v27 }
  0x4e   :  { %2198 = vmatpush3.msra.mxu0 %v132_v12  ;;  %2230 = vmatpush3.msra.mxu1 %v555_v27 }
  0x4f   :  { %2199 = vmatprep.subr.mxu0 %v131_v13 }
  0x50   :  { %2200 = vmatpush3.msra.mxu0 %v131_v13 }
  0x51   :  { %2201 = vmatprep.subr.mxu0 %v130_v14 }
  0x52   :  { %2202 = vmatpush3.msra.mxu0 %v130_v14 }
  0x53   :  { %2204 = vmatmul.mubr.f32.vlgmr.msra.gmra.mxu0 %v2762_v29  ;;  %2253 = vmatprep.subr.mxu0 %v545_v18  ;;  %v554_v29 = vld [vmem:[#allocation3 + $0x238] sm:$0xff] }
  0x54   :  { %2206 = vmatprep.mubr.f32.mxu0 %v2767_v32  ;;  %2254 = vmatpush3.msra.mxu0 %v545_v18  ;;  %v538_v32 = vld [vmem:[#allocation3 + $0x1c0] sm:$0xff] }
  0x55   :  { %2255 = vmatprep.subr.mxu0 %v544_v20  ;;  %2231 = vmatprep.subr.mxu1 %v554_v29 }
  0x56   :  { %2256 = vmatpush3.msra.mxu0 %v544_v20  ;;  %2232 = vmatpush3.msra.mxu1 %v554_v29 }
  0x57   :  { %2207 = vmatmul.mubr.f32.gmra.mxu0 %v2774_v37  ;;  %2257 = vmatprep.subr.mxu0 %v543_v22  ;;  %v550_v37 = vld [vmem:[#allocation3 + $0x218] sm:$0xff] }
  0x58   :  { %2209 = vmatprep.mubr.f32.mxu0 %v2796_v46  ;;  %2258 = vmatpush3.msra.mxu0 %v543_v22  ;;  %v531_v46 = vld [vmem:[#allocation3 + $0x188] sm:$0xff] }
  0x59   :  { %2259 = vmatprep.subr.mxu0 %v542_v24  ;;  %2233 = vmatprep.subr.mxu1 %v553_v31 }
  0x5a   :  { %2260 = vmatpush3.msra.mxu0 %v542_v24  ;;  %2234 = vmatpush3.msra.mxu1 %v553_v31 }
  0x5b   :  { %2210 = vmatmul.mubr.f32.gmra.mxu0 %v2801_v47  ;;  %2261 = vmatprep.subr.mxu0 %v541_v26  ;;  %v2849_v47 = vld [vmem:[#allocation3 + $0x2f8] sm:$0xff] }
  0x5c   :  { %2212 = vmatprep.mubr.f32.mxu0 %v2812_v53  ;;  %2262 = vmatpush3.msra.mxu0 %v541_v26 }
  0x5d   :  { %2263 = vmatprep.subr.mxu0 %v540_v28  ;;  %2235 = vmatprep.subr.mxu1 %v552_v33 }
  0x5e   :  { %2264 = vmatpush3.msra.mxu0 %v540_v28  ;;  %2236 = vmatpush3.msra.mxu1 %v552_v33 }
  0x5f   :  { %2213 = vmatmul.mubr.f32.gmra.mxu0 %v2820_v56  ;;  %2265 = vmatprep.subr.mxu0 %v539_v30 }
  0x60   :  { %2266 = vmatpush3.msra.mxu0 %v539_v30  ;;  %2237 = vmatprep.subr.mxu1 %v551_v35 }
  0x61   :  { %2267 = vmatprep.subr.mxu0 %v538_v32  ;;  %2238 = vmatpush3.msra.mxu1 %v551_v35 }
  0x62   :  { %2268 = vmatpush3.msra.mxu0 %v538_v32  ;;  %2239 = vmatprep.subr.mxu1 %v550_v37 }
  0x63   :  { %2269 = vmatprep.subr.mxu0 %v537_v34  ;;  %2240 = vmatpush3.msra.mxu1 %v550_v37 }
  0x64   :  { %2270 = vmatpush3.msra.mxu0 %v537_v34  ;;  %2241 = vmatprep.subr.mxu1 %v549_v39 }
  0x65   :  { %2271 = vmatprep.subr.mxu0 %v536_v36  ;;  %2242 = vmatpush3.msra.mxu1 %v549_v39 }
  0x66   :  { %2272 = vmatpush3.msra.mxu0 %v536_v36  ;;  %2243 = vmatprep.subr.mxu1 %v548_v42 }
  0x67   :  { %2273 = vmatprep.subr.mxu0 %v535_v38  ;;  %2244 = vmatpush3.msra.mxu1 %v548_v42 }
  0x68   :  { %2274 = vmatpush3.msra.mxu0 %v535_v38  ;;  %2245 = vmatprep.subr.mxu1 %v547_v44 }
  0x69   :  { %2275 = vmatprep.subr.mxu0 %v534_v41  ;;  %2246 = vmatpush3.msra.mxu1 %v547_v44 }
  0x6a   :  { %2276 = vmatpush3.msra.mxu0 %v534_v41  ;;  %2291 = vmatprep.subr.mxu1 %v2849_v47 }
  0x6b   :  { %2277 = vmatprep.subr.mxu0 %v533_v43 }
  0x6c   :  { %2278 = vmatpush3.msra.mxu0 %v533_v43 }
  0x6d   :  { %2279 = vmatprep.subr.mxu0 %v532_v45 }
  0x6e   :  { %2280 = vmatpush3.msra.mxu0 %v532_v45 }
  0x6f   :  { %2281 = vmatprep.subr.mxu0 %v531_v46 }
  0x70   :  { %2282 = vmatpush3.msra.mxu0 %v531_v46 }
  0x71   :  { %2283 = vmatprep.subr.mxu0 %v530_v48 }
  0x72   :  { %2284 = vmatpush3.msra.mxu0 %v530_v48  ;;  %v578_v48 = vld [vmem:[#allocation3 + $0x2f0] sm:$0xff] }
  0xf1   :  { %v2117_v49 = vpop.f32.mrf.mxu0 }
  0xf2   :  { %v2161_v53 = vpop.f32.mrf.mxu1 }
  0xf3   :  { %v212_v50 = vpop.f32.mrf.mxu0  ;;  %v323_v62 = vadd.f32 %v2161_v53, %v2117_v49 }
  0xf4   :  { %v317_v55 = vpop.f32.mrf.mxu1 }
  0xf5   :  { %v318_v1 = vadd.f32 %v317_v55, %v212_v50 }
  0xf6   :  { %v2164_v56 = vpop.f32.mrf.mxu1 }
  0xf7   :  { %v2120_v51 = vpop.f32.mrf.mxu0 }
  0xf8   :  { %v327_v58 = vpop.f32.mrf.mxu1  ;;  %v333_v5 = vadd.f32 %v2164_v56, %v2120_v51  ;;  %v577_v51 = vld [vmem:[#allocation3 + $0x2e8] sm:$0xff] }
  0xf9   :  { %v222_v52 = vpop.f32.mrf.mxu0 }
  0xfa   :  { %v2167_v60 = vpop.f32.mrf.mxu1  ;;  %v328_v9 = vadd.f32 %v327_v58, %v222_v52  ;;  %v574_v58 = vld [vmem:[#allocation3 + $0x2d0] sm:$0xff] }
  0xfb   :  { %v2123_v54 = vpop.f32.mrf.mxu0 }
  0xfc   :  { %v337_v3 = vpop.f32.mrf.mxu1  ;;  %v343_v15 = vadd.f32 %v2167_v60, %v2123_v54  ;;  %v576_v54 = vld [vmem:[#allocation3 + $0x2e0] sm:$0xff] }
  0xfd   :  { %v232_v57 = vpop.f32.mrf.mxu0 }
  0xfe   :  { %v2170_v13 = vpop.f32.mrf.mxu1  ;;  %v338_v20 = vadd.f32 %v337_v3, %v232_v57  ;;  %v575_v57 = vld [vmem:[#allocation3 + $0x2d8] sm:$0xff]  ;;  %v568_v3 = vld [vmem:[#allocation3 + $0x2a0] sm:$0xff] }
  0xff   :  { %v2126_v59 = vpop.f32.mrf.mxu0 }
 0x100   :  { %v347_v24 = vpop.f32.mrf.mxu1  ;;  %v353_v26 = vadd.f32 %v2170_v13, %v2126_v59  ;;  %v883_v13 = vld [vmem:[#allocation3 + $0x368] sm:$0xff] }
 0x101   :  { %v242_v61 = vpop.f32.mrf.mxu0 }
 0x102   :  { %v348_v31 = vadd.f32 %v347_v24, %v242_v61  ;;  %v573_v61 = vld [vmem:[#allocation3 + $0x2c8] sm:$0xff]  ;;  %v878_v24 = vld [vmem:[#allocation3 + $0x340] sm:$0xff] }
 0x113   :  { %v2205_v63 = vpop.f32.mrf.mxu0 }
 0x114   :  { %v462_v2 = vadd.f32 %v2205_v63, %v323_v62  ;;  %v572_v63 = vld [vmem:[#allocation3 + $0x2c0] sm:$0xff] }
 0x115   :  { %v422_v4 = vpop.f32.mrf.mxu0 }
 0x116   :  { %v475_v6 = vadd.f32 %v1782_v0, %v462_v2  ;;  %v461_v7 = vadd.f32 %v422_v4, %v318_v1  ;;  %v570_v1 = vld [vmem:[#allocation3 + $0x2b0] sm:$0xff]  ;;  %v569_v2 = vld [vmem:[#allocation3 + $0x2a8] sm:$0xff]  ;;  %v567_v4 = vld [vmem:[#allocation3 + $0x298] sm:$0xff] }
 0x117   :  { %v2208_v8 = vpop.f32.mrf.mxu0 }
 0x118   :  { %v483_v10 = vmax.f32 %v475_v6, 0.0  ;;  %v474_v11 = vadd.f32 %v1782_v0, %v461_v7  ;;  %v464_v12 = vadd.f32 %v2208_v8, %v333_v5  ;;  %v566_v5 = vld [vmem:[#allocation3 + $0x290] sm:$0xff]  ;;  %v565_v6 = vld [vmem:[#allocation3 + $0x288] sm:$0xff]  ;;  %v564_v7 = vld [vmem:[#allocation3 + $0x280] sm:$0xff] }
 0x119   :  { %v432_v14 = vpop.f32.mrf.mxu0  ;;  %v902_v8 = vld [vmem:[#allocation3 + $0x3f8] sm:$0xff] }
 0x11a   :  { %491 = vst [vmem:[#allocation2 + $0x8] sm:$0xff] %v483_v10  ;;  %v482_v16 = vmax.f32 %v474_v11, 0.0  ;;  %v477_v17 = vadd.f32 %v1782_v0, %v464_v12  ;;  %v463_v18 = vadd.f32 %v432_v14, %v328_v9  ;;  %v901_v9 = vld [vmem:[#allocation3 + $0x3f0] sm:$0xff]  ;;  %v885_v10 = vld [vmem:[#allocation3 + $0x378] sm:$0xff]  ;;  %2329 = vmatprep.subr.mxu0 %v902_v8  ;;  %v900_v12 = vld [vmem:[#allocation3 + $0x3e8] sm:$0xff] }
 0x11b   :  { %v2211_v19 = vpop.f32.mrf.mxu0  ;;  %v884_v11 = vld [vmem:[#allocation3 + $0x370] sm:$0xff]  ;;  %v899_v14 = vld [vmem:[#allocation3 + $0x3e0] sm:$0xff] }
 0x11c   :  { %490 = vst [vmem:[#allocation2] sm:$0xff] %v482_v16  ;;  %v485_v21 = vmax.f32 %v477_v17, 0.0  ;;  %v476_v22 = vadd.f32 %v1782_v0, %v463_v18  ;;  %v466_v23 = vadd.f32 %v2211_v19, %v343_v15  ;;  %v882_v15 = vld [vmem:[#allocation3 + $0x360] sm:$0xff]  ;;  %v898_v16 = vld [vmem:[#allocation3 + $0x3d8] sm:$0xff]  ;;  %v897_v18 = vld [vmem:[#allocation3 + $0x3d0] sm:$0xff] }
 0x11d   :  { %v442_v25 = vpop.f32.mrf.mxu0  ;;  %v881_v17 = vld [vmem:[#allocation3 + $0x358] sm:$0xff]  ;;  %v896_v19 = vld [vmem:[#allocation3 + $0x3c8] sm:$0xff] }
 0x11e   :  { %493 = vst [vmem:[#allocation2 + $0x18] sm:$0xff] %v485_v21  ;;  %v484_v27 = vmax.f32 %v476_v22, 0.0  ;;  %v479_v28 = vadd.f32 %v1782_v0, %v466_v23  ;;  %v465_v29 = vadd.f32 %v442_v25, %v338_v20  ;;  %v880_v20 = vld [vmem:[#allocation3 + $0x350] sm:$0xff]  ;;  %v895_v21 = vld [vmem:[#allocation3 + $0x3c0] sm:$0xff]  ;;  %v879_v22 = vld [vmem:[#allocation3 + $0x348] sm:$0xff] }
 0x11f   :  { %v2214_v30 = vpop.f32.mrf.mxu0  ;;  %v894_v23 = vld [vmem:[#allocation3 + $0x3b8] sm:$0xff]  ;;  %v893_v25 = vld [vmem:[#allocation3 + $0x3b0] sm:$0xff] }
 0x120   :  { %492 = vst [vmem:[#allocation2 + $0x10] sm:$0xff] %v484_v27  ;;  %v487_v32 = vmax.f32 %v479_v28, 0.0  ;;  %v478_v33 = vadd.f32 %v1782_v0, %v465_v29  ;;  %v468_v34 = vadd.f32 %v2214_v30, %v353_v26  ;;  %v877_v26 = vld [vmem:[#allocation3 + $0x338] sm:$0xff]  ;;  %v892_v27 = vld [vmem:[#allocation3 + $0x3a8] sm:$0xff]  ;;  %v876_v28 = vld [vmem:[#allocation3 + $0x330] sm:$0xff] }
 0x121   :  { %v452_v35 = vpop.f32.mrf.mxu0  ;;  %v891_v29 = vld [vmem:[#allocation3 + $0x3a0] sm:$0xff]  ;;  %v875_v30 = vld [vmem:[#allocation3 + $0x328] sm:$0xff] }
 0x122   :  { %495 = vst [vmem:[#allocation2 + $0x28] sm:$0xff] %v487_v32  ;;  %v486_v36 = vmax.f32 %v478_v33, 0.0  ;;  %v481_v37 = vadd.f32 %v1782_v0, %v468_v34  ;;  %v467_v38 = vadd.f32 %v452_v35, %v348_v31  ;;  %v890_v31 = vld [vmem:[#allocation3 + $0x398] sm:$0xff]  ;;  %v874_v32 = vld [vmem:[#allocation3 + $0x320] sm:$0xff]  ;;  %v889_v33 = vld [vmem:[#allocation3 + $0x390] sm:$0xff] }
 0x123   :  { %v498_v39 = vld [vmem:[#allocation2] ss:$2 sm:$0xff]  ;;  %v506_v41 = vld [vmem:[#allocation2 + $0x1] ss:$2 sm:$0xff]  ;;  %v873_v34 = vld [vmem:[#allocation3 + $0x318] sm:$0xff] }
 0x124   :  { %494 = vst [vmem:[#allocation2 + $0x20] sm:$0xff] %v486_v36  ;;  %v489_v42 = vmax.f32 %v481_v37, 0.0  ;;  %v480_v43 = vadd.f32 %v1782_v0, %v467_v38  ;;  %2247 = vmatprep.mubr.f32.mxu1 %v498_v39  ;;  %v515_v44 = vrot.slane %v506_v41, 7  ;;  %v571_v0 = vld [vmem:[#allocation3 + $0x2b8] sm:$0xff]  ;;  %v888_v35 = vld [vmem:[#allocation3 + $0x388] sm:$0xff]  ;;  %v872_v36 = vld [vmem:[#allocation3 + $0x310] sm:$0xff] }
 0x125   :  { %v887_v37 = vld [vmem:[#allocation3 + $0x380] sm:$0xff]  ;;  %v871_v38 = vld [vmem:[#allocation3 + $0x308] sm:$0xff]  ;;  %v919_v39 = vld [vmem:[#allocation3 + $0x478] sm:$0xff] }
 0x126   :  { %497 = vst [vmem:[#allocation2 + $0x38] sm:$0xff] %v489_v42  ;;  %v488_v45 = vmax.f32 %v480_v43, 0.0  ;;  %2285 = vmatprep.mubr.msk.f32.mxu0 %vm2781_vm1, %v515_v44 }
 0x127   :  { %v500_v46 = vld [vmem:[#allocation2 + $0x10] ss:$2 sm:$0xff]  ;;  %v508_v49 = vld [vmem:[#allocation2 + $0x11] ss:$2 sm:$0xff] }
 0x128   :  { %496 = vst [vmem:[#allocation2 + $0x30] sm:$0xff] %v488_v45  ;;  %2248 = vmatmul.mubr.f32.vlgmr.msra.gmra.mxu1 %v500_v46  ;;  %v516_v50 = vrot.slane %v508_v49, 7 }
 0x129   :  { %2292 = vmatpush3.msra.mxu1 %v2849_v47 }
 0x12a   :  { %2293 = vmatprep.subr.mxu1 %v578_v48  ;;  %v517_v52 = vsel %vm67_vm0, %v515_v44, %v516_v50 }
 0x12b   :  { %2294 = vmatpush3.msra.mxu1 %v578_v48  ;;  %2286 = vmatmul.mubr.f32.vlgmr.msra.gmra.mxu0 %v517_v52  ;;  %v502_v53 = vld [vmem:[#allocation2 + $0x20] ss:$2 sm:$0xff]  ;;  %v510_v55 = vld [vmem:[#allocation2 + $0x21] ss:$2 sm:$0xff] }
 0x12c   :  { %2295 = vmatprep.subr.mxu1 %v577_v51  ;;  %2250 = vmatprep.mubr.f32.mxu1 %v502_v53  ;;  %v522_v56 = vrot.slane %v510_v55, 7  ;;  %v1787_v52 = vld [vmem:[%s2999_s2 + $0x1] ss:$0 sm:$0xff] }
 0x12d   :  { %2296 = vmatpush3.msra.mxu1 %v577_v51  ;;  %2330 = vmatpush3.msra.mxu0 %v902_v8 }
 0x12e   :  { %2297 = vmatprep.subr.mxu1 %v576_v54  ;;  %2288 = vmatprep.mubr.msk.f32.mxu0 %vm2781_vm1, %v522_v56 }
 0x12f   :  { %2298 = vmatpush3.msra.mxu1 %v576_v54  ;;  %v504_v47 = vld [vmem:[#allocation2 + $0x30] ss:$2 sm:$0xff]  ;;  %v512_v59 = vld [vmem:[#allocation2 + $0x31] ss:$2 sm:$0xff]  ;;  %2331 = vmatprep.subr.mxu0 %v901_v9 }
 0x130   :  { %2299 = vmatprep.subr.mxu1 %v575_v57  ;;  %2251 = vmatmul.mubr.f32.gmra.mxu1 %v504_v47  ;;  %v523_v60 = vrot.slane %v512_v59, 7 }
 0x131   :  { %2300 = vmatpush3.msra.mxu1 %v575_v57  ;;  %2323 = vmatprep.mubr.f32.mxu1 %v506_v41  ;;  %v870_v41 = vld [vmem:[#allocation3 + $0x300] sm:$0xff] }
 0x132   :  { %2301 = vmatprep.subr.mxu1 %v574_v58  ;;  %v524_v62 = vsel %vm67_vm0, %v522_v56, %v523_v60  ;;  %2332 = vmatpush3.msra.mxu0 %v901_v9 }
 0x133   :  { %2302 = vmatpush3.msra.mxu1 %v574_v58  ;;  %2289 = vmatmul.mubr.f32.gmra.mxu0 %v524_v62 }
 0x134   :  { %2303 = vmatprep.subr.mxu1 %v573_v61  ;;  %2333 = vmatprep.subr.mxu0 %v900_v12 }
 0x135   :  { %2304 = vmatpush3.msra.mxu1 %v573_v61  ;;  %2334 = vmatpush3.msra.mxu0 %v900_v12 }
 0x136   :  { %2305 = vmatprep.subr.mxu1 %v572_v63  ;;  %2335 = vmatprep.subr.mxu0 %v899_v14 }
 0x137   :  { %2306 = vmatpush3.msra.mxu1 %v572_v63  ;;  %2336 = vmatpush3.msra.mxu0 %v899_v14  ;;  %v917_v14 = vld [vmem:[#allocation3 + $0x468] sm:$0xff] }
 0x138   :  { %2307 = vmatprep.subr.mxu1 %v571_v0  ;;  %2337 = vmatprep.subr.mxu0 %v898_v16 }
 0x139   :  { %2308 = vmatpush3.msra.mxu1 %v571_v0  ;;  %2338 = vmatpush3.msra.mxu0 %v898_v16  ;;  %v915_v16 = vld [vmem:[#allocation3 + $0x458] sm:$0xff] }
 0x13a   :  { %2309 = vmatprep.subr.mxu1 %v570_v1  ;;  %2339 = vmatprep.subr.mxu0 %v897_v18 }
 0x13b   :  { %2310 = vmatpush3.msra.mxu1 %v570_v1  ;;  %2340 = vmatpush3.msra.mxu0 %v897_v18  ;;  %v913_v18 = vld [vmem:[#allocation3 + $0x448] sm:$0xff] }
 0x13c   :  { %2311 = vmatprep.subr.mxu1 %v569_v2  ;;  %2341 = vmatprep.subr.mxu0 %v896_v19 }
 0x13d   :  { %2312 = vmatpush3.msra.mxu1 %v569_v2  ;;  %2342 = vmatpush3.msra.mxu0 %v896_v19  ;;  %v912_v19 = vld [vmem:[#allocation3 + $0x440] sm:$0xff] }
 0x13e   :  { %2313 = vmatprep.subr.mxu1 %v568_v3  ;;  %2343 = vmatprep.subr.mxu0 %v895_v21 }
 0x13f   :  { %2314 = vmatpush3.msra.mxu1 %v568_v3  ;;  %2344 = vmatpush3.msra.mxu0 %v895_v21  ;;  %v909_v21 = vld [vmem:[#allocation3 + $0x428] sm:$0xff] }
 0x140   :  { %2315 = vmatprep.subr.mxu1 %v567_v4  ;;  %2345 = vmatprep.subr.mxu0 %v894_v23 }
 0x141   :  { %2316 = vmatpush3.msra.mxu1 %v567_v4  ;;  %2346 = vmatpush3.msra.mxu0 %v894_v23  ;;  %v907_v23 = vld [vmem:[#allocation3 + $0x418] sm:$0xff] }
 0x142   :  { %2317 = vmatprep.subr.mxu1 %v566_v5  ;;  %2347 = vmatprep.subr.mxu0 %v893_v25 }
 0x143   :  { %2318 = vmatpush3.msra.mxu1 %v566_v5  ;;  %2348 = vmatpush3.msra.mxu0 %v893_v25  ;;  %v905_v25 = vld [vmem:[#allocation3 + $0x408] sm:$0xff] }
 0x144   :  { %2319 = vmatprep.subr.mxu1 %v565_v6  ;;  %2349 = vmatprep.subr.mxu0 %v892_v27 }
 0x145   :  { %2320 = vmatpush3.msra.mxu1 %v565_v6  ;;  %2350 = vmatpush3.msra.mxu0 %v892_v27  ;;  %v1201_v27 = vld [vmem:[#allocation3 + $0x578] sm:$0xff] }
 0x146   :  { %2321 = vmatprep.subr.mxu1 %v564_v7  ;;  %2351 = vmatprep.subr.mxu0 %v891_v29 }
 0x147   :  { %2322 = vmatpush3.msra.mxu1 %v564_v7  ;;  %2352 = vmatpush3.msra.mxu0 %v891_v29  ;;  %v1200_v29 = vld [vmem:[#allocation3 + $0x570] sm:$0xff] }
 0x148   :  { %2324 = vmatmul.mubr.f32.vlgmr.msra.gmra.mxu1 %v508_v49  ;;  %2364 = vmatprep.subr.mxu1 %v885_v10 }
 0x149   :  { %2326 = vmatprep.mubr.f32.mxu1 %v510_v55  ;;  %2365 = vmatpush3.msra.mxu1 %v885_v10 }
 0x14a   :  { %2366 = vmatprep.subr.mxu1 %v884_v11  ;;  %2353 = vmatprep.subr.mxu0 %v890_v31 }
 0x14b   :  { %2367 = vmatpush3.msra.mxu1 %v884_v11  ;;  %2354 = vmatpush3.msra.mxu0 %v890_v31  ;;  %v918_v11 = vld [vmem:[#allocation3 + $0x470] sm:$0xff] }
 0x14c   :  { %2327 = vmatmul.mubr.f32.gmra.mxu1 %v512_v59  ;;  %2368 = vmatprep.subr.mxu1 %v883_v13  ;;  %v1183_v31 = vld [vmem:[#allocation3 + $0x4f0] sm:$0xff] }
 0x14d   :  { %2369 = vmatpush3.msra.mxu1 %v883_v13  ;;  %2355 = vmatprep.subr.mxu0 %v889_v33 }
 0x14e   :  { %2370 = vmatprep.subr.mxu1 %v882_v15  ;;  %2356 = vmatpush3.msra.mxu0 %v889_v33  ;;  %v1182_v33 = vld [vmem:[#allocation3 + $0x4e8] sm:$0xff] }
 0x14f   :  { %2371 = vmatpush3.msra.mxu1 %v882_v15  ;;  %2357 = vmatprep.subr.mxu0 %v888_v35  ;;  %v916_v15 = vld [vmem:[#allocation3 + $0x460] sm:$0xff] }
 0x150   :  { %2372 = vmatprep.subr.mxu1 %v881_v17  ;;  %2358 = vmatpush3.msra.mxu0 %v888_v35  ;;  %v1181_v35 = vld [vmem:[#allocation3 + $0x4e0] sm:$0xff] }
 0x151   :  { %2373 = vmatpush3.msra.mxu1 %v881_v17  ;;  %2359 = vmatprep.subr.mxu0 %v887_v37  ;;  %v914_v17 = vld [vmem:[#allocation3 + $0x450] sm:$0xff] }
 0x152   :  { %2374 = vmatprep.subr.mxu1 %v880_v20  ;;  %2360 = vmatpush3.msra.mxu0 %v887_v37  ;;  %v1180_v37 = vld [vmem:[#allocation3 + $0x4d8] sm:$0xff] }
 0x153   :  { %2375 = vmatpush3.msra.mxu1 %v880_v20  ;;  %2399 = vmatprep.subr.mxu0 %v919_v39  ;;  %v911_v20 = vld [vmem:[#allocation3 + $0x438] sm:$0xff] }
 0x154   :  { %2376 = vmatprep.subr.mxu1 %v879_v22 }
 0x155   :  { %2377 = vmatpush3.msra.mxu1 %v879_v22  ;;  %v908_v22 = vld [vmem:[#allocation3 + $0x420] sm:$0xff] }
 0x156   :  { %2378 = vmatprep.subr.mxu1 %v878_v24 }
 0x157   :  { %2379 = vmatpush3.msra.mxu1 %v878_v24  ;;  %v906_v24 = vld [vmem:[#allocation3 + $0x410] sm:$0xff] }
 0x158   :  { %2380 = vmatprep.subr.mxu1 %v877_v26 }
 0x159   :  { %2381 = vmatpush3.msra.mxu1 %v877_v26  ;;  %v904_v26 = vld [vmem:[#allocation3 + $0x400] sm:$0xff] }
 0x15a   :  { %2382 = vmatprep.subr.mxu1 %v876_v28 }
 0x15b   :  { %2383 = vmatpush3.msra.mxu1 %v876_v28  ;;  %v2722_v28 = vmov 0.0  }
 0x15c   :  { %2384 = vmatprep.subr.mxu1 %v875_v30 }
 0x15d   :  { %2385 = vmatpush3.msra.mxu1 %v875_v30  ;;  %v1184_v30 = vld [vmem:[#allocation3 + $0x4f8] sm:$0xff] }
 0x15e   :  { %2386 = vmatprep.subr.mxu1 %v874_v32 }
 0x15f   :  { %2387 = vmatpush3.msra.mxu1 %v874_v32  ;;  %v1199_v32 = vld [vmem:[#allocation3 + $0x568] sm:$0xff] }
 0x160   :  { %2388 = vmatprep.subr.mxu1 %v873_v34 }
 0x161   :  { %2389 = vmatpush3.msra.mxu1 %v873_v34  ;;  %v1198_v34 = vld [vmem:[#allocation3 + $0x560] sm:$0xff] }
 0x162   :  { %2390 = vmatprep.subr.mxu1 %v872_v36 }
 0x163   :  { %2391 = vmatpush3.msra.mxu1 %v872_v36  ;;  %v1197_v36 = vld [vmem:[#allocation3 + $0x558] sm:$0xff] }
 0x164   :  { %2392 = vmatprep.subr.mxu1 %v871_v38 }
 0x165   :  { %2393 = vmatpush3.msra.mxu1 %v871_v38  ;;  %v1196_v38 = vld [vmem:[#allocation3 + $0x550] sm:$0xff] }
 0x166   :  { %2394 = vmatprep.subr.mxu1 %v870_v41 }
 0x167   :  { %2395 = vmatpush3.msra.mxu1 %v870_v41  ;;  %v1194_v41 = vld [vmem:[#allocation3 + $0x540] sm:$0xff] }
 0x168   :  { %2434 = vmatprep.subr.mxu1 %v2722_v28 }
 0x1e8   :  { %v2249_v42 = vpop.f32.mrf.mxu1 }
 0x1ea   :  { %v646_v43 = vpop.f32.mrf.mxu1 }
 0x1eb   :  { %v2287_v44 = vpop.f32.mrf.mxu0 }
 0x1ec   :  { %v737_v50 = vadd.f32 %v2287_v44, %v2249_v42  ;;  %v1193_v42 = vld [vmem:[#allocation3 + $0x538] sm:$0xff]  ;;  %v1192_v44 = vld [vmem:[#allocation3 + $0x530] sm:$0xff] }
 0x1ed   :  { %v731_v46 = vpop.f32.mrf.mxu0 }
 0x1ee   :  { %v732_v53 = vadd.f32 %v731_v46, %v646_v43  ;;  %v1179_v43 = vld [vmem:[#allocation3 + $0x4d0] sm:$0xff]  ;;  %v1191_v46 = vld [vmem:[#allocation3 + $0x528] sm:$0xff] }
 0x1f0   :  { %v2252_v45 = vpop.f32.mrf.mxu1 }
 0x1f2   :  { %v656_v48 = vpop.f32.mrf.mxu1 }
 0x1f3   :  { %v2290_v49 = vpop.f32.mrf.mxu0 }
 0x1f4   :  { %v747_v57 = vadd.f32 %v2290_v49, %v2252_v45  ;;  %v1178_v45 = vld [vmem:[#allocation3 + $0x4c8] sm:$0xff]  ;;  %v1190_v49 = vld [vmem:[#allocation3 + $0x520] sm:$0xff] }
 0x1f5   :  { %v741_v55 = vpop.f32.mrf.mxu0 }
 0x1f6   :  { %v742_v60 = vadd.f32 %v741_v55, %v656_v48  ;;  %v1177_v48 = vld [vmem:[#allocation3 + $0x4c0] sm:$0xff]  ;;  %v1187_v55 = vld [vmem:[#allocation3 + $0x508] sm:$0xff] }
 0x208   :  { %v2325_v51 = vpop.f32.mrf.mxu1 }
 0x209   :  { %v836_v54 = vadd.f32 %v2325_v51, %v737_v50  ;;  %v1176_v50 = vld [vmem:[#allocation3 + $0x4b8] sm:$0xff] }
 0x20a   :  { %v816_v56 = vpop.f32.mrf.mxu1  ;;  %v1189_v51 = vld [vmem:[#allocation3 + $0x518] sm:$0xff] }
 0x20b   :  { %v845_v47 = vadd.f32 %v1787_v52, %v836_v54  ;;  %v835_v58 = vadd.f32 %v816_v56, %v732_v53  ;;  %v1188_v53 = vld [vmem:[#allocation3 + $0x510] sm:$0xff]  ;;  %v1174_v54 = vld [vmem:[#allocation3 + $0x4a8] sm:$0xff]  ;;  %v1173_v56 = vld [vmem:[#allocation3 + $0x4a0] sm:$0xff] }
 0x20c   :  { %v2328_v59 = vpop.f32.mrf.mxu1 }
 0x20d   :  { %v849_v61 = vmax.f32 %v845_v47, 0.0  ;;  %v844_v62 = vadd.f32 %v1787_v52, %v835_v58  ;;  %v838_v63 = vadd.f32 %v2328_v59, %v747_v57  ;;  %v1186_v57 = vld [vmem:[#allocation3 + $0x500] sm:$0xff]  ;;  %v1172_v47 = vld [vmem:[#allocation3 + $0x498] sm:$0xff]  ;;  %v1171_v58 = vld [vmem:[#allocation3 + $0x490] sm:$0xff] }
 0x20e   :  { %v826_v0 = vpop.f32.mrf.mxu1  ;;  %v1170_v59 = vld [vmem:[#allocation3 + $0x488] sm:$0xff] }
 0x20f   :  { %853 = vst [vmem:[#allocation2 + $0x8] sm:$0xff] %v849_v61  ;;  %v848_v1 = vmax.f32 %v844_v62, 0.0  ;;  %v847_v2 = vadd.f32 %v1787_v52, %v838_v63  ;;  %v837_v3 = vadd.f32 %v826_v0, %v742_v60  ;;  %v1169_v60 = vld [vmem:[#allocation3 + $0x480] sm:$0xff] }
 0x211   :  { %852 = vst [vmem:[#allocation2] sm:$0xff] %v848_v1  ;;  %v851_v4 = vmax.f32 %v847_v2, 0.0  ;;  %v846_v5 = vadd.f32 %v1787_v52, %v837_v3  ;;  %v1175_v52 = vld [vmem:[#allocation3 + $0x4b0] sm:$0xff]  ;;  %v1792_v3 = vld [vmem:[%s2999_s2 + $0x2] ss:$0 sm:$0xff] }
 0x213   :  { %855 = vst [vmem:[#allocation2 + $0x18] sm:$0xff] %v851_v4  ;;  %v850_v6 = vmax.f32 %v846_v5, 0.0 }
 0x215   :  { %854 = vst [vmem:[#allocation2 + $0x10] sm:$0xff] %v850_v6 }
 0x218   :  { %v856_v7 = vld [vmem:[#allocation2] ss:$2 sm:$0xff]  ;;  %v859_v8 = vld [vmem:[#allocation2 + $0x1] ss:$2 sm:$0xff] }
 0x219   :  { %2361 = vmatprep.mubr.f32.mxu0 %v856_v7  ;;  %v862_v9 = vrot.slane %v859_v8, 7 }
 0x21b   :  { %2396 = vmatprep.mubr.msk.f32.mxu1 %vm2781_vm1, %v862_v9 }
 0x21c   :  { %v858_v10 = vld [vmem:[#allocation2 + $0x10] ss:$2 sm:$0xff]  ;;  %v860_v12 = vld [vmem:[#allocation2 + $0x11] ss:$2 sm:$0xff] }
 0x21d   :  { %2362 = vmatmul.mubr.f32.vlgmr.msra.gmra.mxu0 %v858_v10  ;;  %v865_v13 = vrot.slane %v860_v12, 7 }
 0x21e   :  { %2400 = vmatpush3.msra.mxu0 %v919_v39  ;;  %2431 = vmatprep.mubr.f32.mxu0 %v859_v8  ;;  %v1195_v39 = vld [vmem:[#allocation3 + $0x548] sm:$0xff] }
 0x21f   :  { %2401 = vmatprep.subr.mxu0 %v918_v11  ;;  %2397 = vmatmul.mubr.msk.f32.vlgmr.msra.gmra.mxu1 %vm2781_vm1, %v865_v13 }
 0x220   :  { %2402 = vmatpush3.msra.mxu0 %v918_v11  ;;  %2435 = vmatpush3.msra.mxu1 %v1201_v27  ;;  %v1208_v27 = vld [vmem:[#allocation3 + $0x5a8] sm:$0xff] }
 0x221   :  { %2403 = vmatprep.subr.mxu0 %v917_v14  ;;  %2436 = vmatprep.subr.mxu1 %v2722_v28 }
 0x222   :  { %2404 = vmatpush3.msra.mxu0 %v917_v14  ;;  %2437 = vmatpush3.msra.mxu1 %v1200_v29  ;;  %v1207_v29 = vld [vmem:[#allocation3 + $0x5a0] sm:$0xff] }
 0x223   :  { %2405 = vmatprep.subr.mxu0 %v916_v15  ;;  %2438 = vmatprep.subr.mxu1 %v2722_v28 }
 0x224   :  { %2406 = vmatpush3.msra.mxu0 %v916_v15  ;;  %2439 = vmatpush3.msra.mxu1 %v1199_v32  ;;  %v1217_v15 = vld [vmem:[#allocation3 + $0x5f0] sm:$0xff]  ;;  %v1204_v32 = vld [vmem:[#allocation3 + $0x588] sm:$0xff] }
 0x225   :  { %2407 = vmatprep.subr.mxu0 %v915_v16  ;;  %2440 = vmatprep.subr.mxu1 %v2722_v28 }
 0x226   :  { %2408 = vmatpush3.msra.mxu0 %v915_v16  ;;  %2441 = vmatpush3.msra.mxu1 %v1198_v34  ;;  %v1481_v34 = vld [vmem:[#allocation3 + $0x6f8] sm:$0xff] }
 0x227   :  { %2409 = vmatprep.subr.mxu0 %v914_v17  ;;  %2442 = vmatprep.subr.mxu1 %v2722_v28 }
 0x228   :  { %2410 = vmatpush3.msra.mxu0 %v914_v17  ;;  %2443 = vmatpush3.msra.mxu1 %v1197_v36  ;;  %v1216_v17 = vld [vmem:[#allocation3 + $0x5e8] sm:$0xff]  ;;  %v1464_v36 = vld [vmem:[#allocation3 + $0x678] sm:$0xff] }
 0x229   :  { %2411 = vmatprep.subr.mxu0 %v913_v18  ;;  %2444 = vmatprep.subr.mxu1 %v2722_v28 }
 0x22a   :  { %2412 = vmatpush3.msra.mxu0 %v913_v18  ;;  %2445 = vmatpush3.msra.mxu1 %v1196_v38  ;;  %v1463_v38 = vld [vmem:[#allocation3 + $0x670] sm:$0xff] }
 0x22b   :  { %2413 = vmatprep.subr.mxu0 %v912_v19  ;;  %2446 = vmatprep.subr.mxu1 %v2722_v28 }
 0x22c   :  { %2414 = vmatpush3.msra.mxu0 %v912_v19  ;;  %2447 = vmatpush3.msra.mxu1 %v1195_v39  ;;  %v1462_v39 = vld [vmem:[#allocation3 + $0x668] sm:$0xff] }
 0x22d   :  { %2415 = vmatprep.subr.mxu0 %v911_v20  ;;  %2448 = vmatprep.subr.mxu1 %v2722_v28 }
 0x22e   :  { %2416 = vmatpush3.msra.mxu0 %v911_v20  ;;  %2449 = vmatpush3.msra.mxu1 %v1194_v41  ;;  %v1478_v41 = vld [vmem:[#allocation3 + $0x6e0] sm:$0xff] }
 0x22f   :  { %2417 = vmatprep.subr.mxu0 %v910_v40  ;;  %2450 = vmatprep.subr.mxu1 %v2722_v28 }
 0x230   :  { %2418 = vmatpush3.msra.mxu0 %v910_v40  ;;  %2451 = vmatpush3.msra.mxu1 %v1193_v42  ;;  %v1215_v40 = vld [vmem:[#allocation3 + $0x5e0] sm:$0xff] }
 0x231   :  { %2419 = vmatprep.subr.mxu0 %v909_v21  ;;  %2452 = vmatprep.subr.mxu1 %v2722_v28  ;;  %v1461_v42 = vld [vmem:[#allocation3 + $0x660] sm:$0xff] }
 0x232   :  { %2420 = vmatpush3.msra.mxu0 %v909_v21  ;;  %2453 = vmatpush3.msra.mxu1 %v1192_v44  ;;  %v1214_v21 = vld [vmem:[#allocation3 + $0x5d8] sm:$0xff] }
 0x233   :  { %2421 = vmatprep.subr.mxu0 %v908_v22  ;;  %2454 = vmatprep.subr.mxu1 %v2722_v28  ;;  %v1460_v44 = vld [vmem:[#allocation3 + $0x658] sm:$0xff] }
 0x234   :  { %2422 = vmatpush3.msra.mxu0 %v908_v22  ;;  %2455 = vmatpush3.msra.mxu1 %v1191_v46  ;;  %v1213_v22 = vld [vmem:[#allocation3 + $0x5d0] sm:$0xff] }
 0x235   :  { %2423 = vmatprep.subr.mxu0 %v907_v23  ;;  %2456 = vmatprep.subr.mxu1 %v2722_v28  ;;  %v1459_v46 = vld [vmem:[#allocation3 + $0x650] sm:$0xff] }
 0x236   :  { %2424 = vmatpush3.msra.mxu0 %v907_v23  ;;  %2457 = vmatpush3.msra.mxu1 %v1190_v49  ;;  %v1212_v23 = vld [vmem:[#allocation3 + $0x5c8] sm:$0xff]  ;;  %v1474_v49 = vld [vmem:[#allocation3 + $0x6c0] sm:$0xff] }
 0x237   :  { %2425 = vmatprep.subr.mxu0 %v906_v24  ;;  %2458 = vmatprep.subr.mxu1 %v2722_v28 }
 0x238   :  { %2426 = vmatpush3.msra.mxu0 %v906_v24  ;;  %2459 = vmatpush3.msra.mxu1 %v1189_v51  ;;  %v1211_v24 = vld [vmem:[#allocation3 + $0x5c0] sm:$0xff]  ;;  %v1472_v51 = vld [vmem:[#allocation3 + $0x6b0] sm:$0xff] }
 0x239   :  { %2427 = vmatprep.subr.mxu0 %v905_v25  ;;  %2460 = vmatprep.subr.mxu1 %v2722_v28 }
 0x23a   :  { %2428 = vmatpush3.msra.mxu0 %v905_v25  ;;  %2461 = vmatpush3.msra.mxu1 %v1188_v53  ;;  %v1210_v25 = vld [vmem:[#allocation3 + $0x5b8] sm:$0xff]  ;;  %v1471_v53 = vld [vmem:[#allocation3 + $0x6a8] sm:$0xff] }
 0x23b   :  { %2429 = vmatprep.subr.mxu0 %v904_v26  ;;  %2462 = vmatprep.subr.mxu1 %v2722_v28 }
 0x23c   :  { %2430 = vmatpush3.msra.mxu0 %v904_v26  ;;  %2463 = vmatpush3.msra.mxu1 %v1187_v55  ;;  %v1209_v26 = vld [vmem:[#allocation3 + $0x5b0] sm:$0xff]  ;;  %v1470_v55 = vld [vmem:[#allocation3 + $0x6a0] sm:$0xff] }
 0x23d   :  { %2432 = vmatmul.mubr.f32.vlgmr.msra.gmra.mxu0 %v860_v12  ;;  %2469 = vmatprep.subr.mxu0 %v2722_v28  ;;  %v1218_v12 = vld [vmem:[#allocation3 + $0x5f8] sm:$0xff] }
 0x23e   :  { %2470 = vmatpush3.msra.mxu0 %v1184_v30  ;;  %2464 = vmatprep.subr.mxu1 %v2722_v28  ;;  %v1206_v30 = vld [vmem:[#allocation3 + $0x598] sm:$0xff] }
 0x23f   :  { %2471 = vmatprep.subr.mxu0 %v2722_v28  ;;  %2465 = vmatpush3.msra.mxu1 %v1186_v57  ;;  %v1469_v57 = vld [vmem:[#allocation3 + $0x698] sm:$0xff] }
 0x240   :  { %2472 = vmatpush3.msra.mxu0 %v1183_v31  ;;  %2466 = vmatprep.mubr.msk.f32.mxu1 %vm2723_vm2, %v2722_v28  ;;  %v1205_v31 = vld [vmem:[#allocation3 + $0x590] sm:$0xff] }
 0x241   :  { %2473 = vmatprep.subr.mxu0 %v2722_v28  ;;  %2504 = vmatprep.subr.mxu1 %v2722_v28 }
 0x242   :  { %2474 = vmatpush3.msra.mxu0 %v1182_v33  ;;  %2501 = vmatprep.mubr.msk.f32.mxu0 %vm2723_vm2, %v2722_v28  ;;  %v1203_v33 = vld [vmem:[#allocation3 + $0x580] sm:$0xff] }
 0x243   :  { %2475 = vmatprep.subr.mxu0 %v2722_v28 }
 0x244   :  { %2476 = vmatpush3.msra.mxu0 %v1181_v35  ;;  %v1480_v35 = vld [vmem:[#allocation3 + $0x6f0] sm:$0xff] }
 0x245   :  { %2477 = vmatprep.subr.mxu0 %v2722_v28 }
 0x246   :  { %2478 = vmatpush3.msra.mxu0 %v1180_v37  ;;  %v1479_v37 = vld [vmem:[#allocation3 + $0x6e8] sm:$0xff] }
 0x247   :  { %2479 = vmatprep.subr.mxu0 %v2722_v28 }
 0x248   :  { %2480 = vmatpush3.msra.mxu0 %v1179_v43  ;;  %v1477_v43 = vld [vmem:[#allocation3 + $0x6d8] sm:$0xff] }
 0x249   :  { %2481 = vmatprep.subr.mxu0 %v2722_v28 }
 0x24a   :  { %2482 = vmatpush3.msra.mxu0 %v1178_v45  ;;  %v1476_v45 = vld [vmem:[#allocation3 + $0x6d0] sm:$0xff] }
 0x24b   :  { %2483 = vmatprep.subr.mxu0 %v2722_v28 }
 0x24c   :  { %2484 = vmatpush3.msra.mxu0 %v1177_v48  ;;  %v1475_v48 = vld [vmem:[#allocation3 + $0x6c8] sm:$0xff] }
 0x24d   :  { %2485 = vmatprep.subr.mxu0 %v2722_v28 }
 0x24e   :  { %2486 = vmatpush3.msra.mxu0 %v1176_v50  ;;  %v1473_v50 = vld [vmem:[#allocation3 + $0x6b8] sm:$0xff] }
 0x24f   :  { %2487 = vmatprep.subr.mxu0 %v2722_v28 }
 0x250   :  { %2488 = vmatpush3.msra.mxu0 %v1175_v52  ;;  %v1458_v52 = vld [vmem:[#allocation3 + $0x648] sm:$0xff] }
 0x251   :  { %2489 = vmatprep.subr.mxu0 %v2722_v28 }
 0x252   :  { %2490 = vmatpush3.msra.mxu0 %v1174_v54  ;;  %v1457_v54 = vld [vmem:[#allocation3 + $0x640] sm:$0xff] }
 0x253   :  { %2491 = vmatprep.subr.mxu0 %v2722_v28 }
 0x254   :  { %2492 = vmatpush3.msra.mxu0 %v1173_v56  ;;  %v1456_v56 = vld [vmem:[#allocation3 + $0x638] sm:$0xff] }
 0x255   :  { %2493 = vmatprep.subr.mxu0 %v2722_v28 }
 0x256   :  { %2494 = vmatpush3.msra.mxu0 %v1172_v47  ;;  %v1455_v47 = vld [vmem:[#allocation3 + $0x630] sm:$0xff] }
 0x257   :  { %2495 = vmatprep.subr.mxu0 %v2722_v28 }
 0x258   :  { %2496 = vmatpush3.msra.mxu0 %v1171_v58  ;;  %v1468_v58 = vld [vmem:[#allocation3 + $0x690] sm:$0xff] }
 0x259   :  { %2497 = vmatprep.subr.mxu0 %v2722_v28 }
 0x25a   :  { %2498 = vmatpush3.msra.mxu0 %v1170_v59  ;;  %v1454_v59 = vld [vmem:[#allocation3 + $0x628] sm:$0xff] }
 0x25b   :  { %2499 = vmatprep.subr.mxu0 %v2722_v28 }
 0x25c   :  { %2500 = vmatpush3.msra.mxu0 %v1169_v60  ;;  %v1467_v60 = vld [vmem:[#allocation3 + $0x688] sm:$0xff] }
 0x25d   :  { %2539 = vmatprep.subr.mxu0 %v2722_v28 }
 0x2dd   :  { %v2363_v61 = vpop.f32.mrf.mxu0 }
 0x2df   :  { %v2398_v62 = vpop.f32.mrf.mxu1  ;;  %v986_v63 = vpop.f32.mrf.mxu0 }
 0x2e0   :  { %v1067_v1 = vadd.f32 %v2398_v62, %v2363_v61  ;;  %v1453_v61 = vld [vmem:[#allocation3 + $0x620] sm:$0xff] }
 0x2e1   :  { %v1061_v0 = vpop.f32.mrf.mxu1  ;;  %v1466_v62 = vld [vmem:[#allocation3 + $0x680] sm:$0xff] }
 0x2e2   :  { %v1062_v4 = vadd.f32 %v1061_v0, %v986_v63  ;;  %v1452_v63 = vld [vmem:[#allocation3 + $0x618] sm:$0xff]  ;;  %v1451_v0 = vld [vmem:[#allocation3 + $0x610] sm:$0xff] }
 0x2fd   :  { %v2433_v2 = vpop.f32.mrf.mxu0 }
 0x2fe   :  { %v1146_v5 = vadd.f32 %v2433_v2, %v1067_v1  ;;  %v1450_v1 = vld [vmem:[#allocation3 + $0x608] sm:$0xff]  ;;  %v1449_v2 = vld [vmem:[#allocation3 + $0x600] sm:$0xff] }
 0x2ff   :  { %v1136_v6 = vpop.f32.mrf.mxu0 }
 0x300   :  { %v1153_v7 = vadd.f32 %v1792_v3, %v1146_v5  ;;  %v1145_v8 = vadd.f32 %v1136_v6, %v1062_v4 }
 0x302   :  { %v1155_v9 = vmax.f32 %v1153_v7, 0.0  ;;  %v1152_v10 = vadd.f32 %v1792_v3, %v1145_v8 }
 0x304   :  { %1157 = vst [vmem:[#allocation2 + $0x8] sm:$0xff] %v1155_v9  ;;  %v1154_v11 = vmax.f32 %v1152_v10, 0.0  ;;  %v1793_v9 = vld [vmem:[%s2999_s2 + $0x3] ss:$0 sm:$0xff] }
 0x306   :  { %1156 = vst [vmem:[#allocation2] sm:$0xff] %v1154_v11 }
 0x30d   :  { %v1158_v13 = vld [vmem:[#allocation2] ss:$2 sm:$0xff]  ;;  %v1159_v14 = vld [vmem:[#allocation2 + $0x1] ss:$2 sm:$0xff] }
 0x30e   :  { %2467 = vmatmul.mubr.f32.vlgmr.msra.gmra.mxu1 %v1158_v13  ;;  %v1161_v16 = vrot.slane %v1159_v14, 7 }
 0x30f   :  { %2505 = vmatpush3.msra.mxu1 %v1218_v12  ;;  %2536 = vmatprep.mubr.msk.f32.mxu1 %vm2723_vm2, %v2722_v28 }
 0x310   :  { %2506 = vmatprep.subr.mxu1 %v2722_v28  ;;  %v1163_v18 = vsel %vm67_vm0, 0.0, %v1161_v16 }
 0x311   :  { %2507 = vmatpush3.msra.mxu1 %v1217_v15  ;;  %v1165_v19 = vsel %vm1164_vm3, %v1163_v18, 0.0 }
 0x312   :  { %2508 = vmatprep.subr.mxu1 %v2722_v28  ;;  %v1167_v20 = vsel %vm1166_vm4, %v1165_v19, %v1161_v16  ;;  %v1496_v19 = vld [vmem:[#allocation3 + $0x768] sm:$0xff] }
 0x313   :  { %2509 = vmatpush3.msra.mxu1 %v1216_v17  ;;  %2502 = vmatmul.mubr.f32.vlgmr.msra.gmra.mxu0 %v1167_v20  ;;  %v1497_v17 = vld [vmem:[#allocation3 + $0x770] sm:$0xff] }
 0x314   :  { %2510 = vmatprep.subr.mxu1 %v2722_v28  ;;  %2571 = vmatprep.mubr.msk.f32.mxu0 %vm2723_vm2, %v2722_v28 }
 0x315   :  { %2511 = vmatpush3.msra.mxu1 %v1215_v40  ;;  %2540 = vmatpush3.msra.mxu0 %v1481_v34  ;;  %v1484_v34 = vld [vmem:[#allocation3 + $0x708] sm:$0xff] }
 0x316   :  { %2512 = vmatprep.subr.mxu1 %v2722_v28  ;;  %2541 = vmatprep.subr.mxu0 %v2722_v28 }
 0x317   :  { %2513 = vmatpush3.msra.mxu1 %v1214_v21  ;;  %2542 = vmatpush3.msra.mxu0 %v1480_v35  ;;  %v1483_v35 = vld [vmem:[#allocation3 + $0x700] sm:$0xff] }
 0x318   :  { %2514 = vmatprep.subr.mxu1 %v2722_v28  ;;  %2543 = vmatprep.subr.mxu0 %v2722_v28 }
 0x319   :  { %2515 = vmatpush3.msra.mxu1 %v1213_v22  ;;  %2544 = vmatpush3.msra.mxu0 %v1479_v37  ;;  %v1495_v22 = vld [vmem:[#allocation3 + $0x760] sm:$0xff] }
 0x31a   :  { %2516 = vmatprep.subr.mxu1 %v2722_v28  ;;  %2545 = vmatprep.subr.mxu0 %v2722_v28 }
 0x31b   :  { %2517 = vmatpush3.msra.mxu1 %v1212_v23  ;;  %2546 = vmatpush3.msra.mxu0 %v1478_v41  ;;  %v1494_v23 = vld [vmem:[#allocation3 + $0x758] sm:$0xff] }
 0x31c   :  { %2518 = vmatprep.subr.mxu1 %v2722_v28  ;;  %2547 = vmatprep.subr.mxu0 %v2722_v28 }
 0x31d   :  { %2519 = vmatpush3.msra.mxu1 %v1211_v24  ;;  %2548 = vmatpush3.msra.mxu0 %v1477_v43  ;;  %v1493_v24 = vld [vmem:[#allocation3 + $0x750] sm:$0xff]  ;;  %v1794_v43 = vld [vmem:[%s2999_s2 + $0x4] ss:$0 sm:$0xff] }
 0x31e   :  { %2520 = vmatprep.subr.mxu1 %v2722_v28  ;;  %2549 = vmatprep.subr.mxu0 %v2722_v28 }
 0x31f   :  { %2521 = vmatpush3.msra.mxu1 %v1210_v25  ;;  %2550 = vmatpush3.msra.mxu0 %v1476_v45  ;;  %v1492_v25 = vld [vmem:[#allocation3 + $0x748] sm:$0xff] }
 0x320   :  { %2522 = vmatprep.subr.mxu1 %v2722_v28  ;;  %2551 = vmatprep.subr.mxu0 %v2722_v28 }
 0x321   :  { %2523 = vmatpush3.msra.mxu1 %v1209_v26  ;;  %2552 = vmatpush3.msra.mxu0 %v1475_v48  ;;  %v1491_v26 = vld [vmem:[#allocation3 + $0x740] sm:$0xff] }
 0x322   :  { %2524 = vmatprep.subr.mxu1 %v2722_v28  ;;  %2553 = vmatprep.subr.mxu0 %v2722_v28 }
 0x323   :  { %2525 = vmatpush3.msra.mxu1 %v1208_v27  ;;  %2554 = vmatpush3.msra.mxu0 %v1474_v49  ;;  %v1490_v27 = vld [vmem:[#allocation3 + $0x738] sm:$0xff] }
 0x324   :  { %2526 = vmatprep.subr.mxu1 %v2722_v28  ;;  %2555 = vmatprep.subr.mxu0 %v2722_v28 }
 0x325   :  { %2527 = vmatpush3.msra.mxu1 %v1207_v29  ;;  %2556 = vmatpush3.msra.mxu0 %v1473_v50  ;;  %v1489_v29 = vld [vmem:[#allocation3 + $0x730] sm:$0xff] }
 0x326   :  { %2528 = vmatprep.subr.mxu1 %v2722_v28  ;;  %2557 = vmatprep.subr.mxu0 %v2722_v28 }
 0x327   :  { %2529 = vmatpush3.msra.mxu1 %v1206_v30  ;;  %2558 = vmatpush3.msra.mxu0 %v1472_v51  ;;  %v1488_v30 = vld [vmem:[#allocation3 + $0x728] sm:$0xff] }
 0x328   :  { %2530 = vmatprep.subr.mxu1 %v2722_v28  ;;  %2559 = vmatprep.subr.mxu0 %v2722_v28 }
 0x329   :  { %2531 = vmatpush3.msra.mxu1 %v1205_v31  ;;  %2560 = vmatpush3.msra.mxu0 %v1471_v53  ;;  %v1487_v31 = vld [vmem:[#allocation3 + $0x720] sm:$0xff] }
 0x32a   :  { %2532 = vmatprep.subr.mxu1 %v2722_v28  ;;  %2561 = vmatprep.subr.mxu0 %v2722_v28 }
 0x32b   :  { %2533 = vmatpush3.msra.mxu1 %v1204_v32  ;;  %2562 = vmatpush3.msra.mxu0 %v1470_v55  ;;  %v1486_v32 = vld [vmem:[#allocation3 + $0x718] sm:$0xff] }
 0x32c   :  { %2534 = vmatprep.subr.mxu1 %v2722_v28  ;;  %2563 = vmatprep.subr.mxu0 %v2722_v28 }
 0x32d   :  { %2535 = vmatpush3.msra.mxu1 %v1203_v33  ;;  %2564 = vmatpush3.msra.mxu0 %v1469_v57  ;;  %v1485_v33 = vld [vmem:[#allocation3 + $0x710] sm:$0xff] }
 0x32e   :  { %2537 = vmatmul.mubr.f32.vlgmr.msra.gmra.mxu1 %v1159_v14  ;;  %2574 = vmatprep.subr.mxu1 %v2722_v28  ;;  %v1498_v14 = vld [vmem:[#allocation3 + $0x778] sm:$0xff] }
 0x32f   :  { %2606 = vmatprep.mubr.msk.f32.mxu1 %vm2723_vm2, %v2722_v28  ;;  %2575 = vmatpush3.msra.mxu1 %v1464_v36 }
 0x330   :  { %2576 = vmatprep.subr.mxu1 %v2722_v28  ;;  %2565 = vmatprep.subr.mxu0 %v2722_v28 }
 0x331   :  { %2577 = vmatpush3.msra.mxu1 %v1463_v38  ;;  %2566 = vmatpush3.msra.mxu0 %v1468_v58 }
 0x332   :  { %2578 = vmatprep.subr.mxu1 %v2722_v28  ;;  %2567 = vmatprep.subr.mxu0 %v2722_v28 }
 0x333   :  { %2579 = vmatpush3.msra.mxu1 %v1462_v39  ;;  %2568 = vmatpush3.msra.mxu0 %v1467_v60 }
 0x334   :  { %2580 = vmatprep.subr.mxu1 %v2722_v28  ;;  %2569 = vmatprep.subr.mxu0 %v2722_v28 }
 0x335   :  { %2581 = vmatpush3.msra.mxu1 %v1461_v42  ;;  %2570 = vmatpush3.msra.mxu0 %v1466_v62 }
 0x336   :  { %2582 = vmatprep.subr.mxu1 %v2722_v28  ;;  %2609 = vmatprep.subr.mxu0 %v2722_v28 }
 0x337   :  { %2583 = vmatpush3.msra.mxu1 %v1460_v44 }
 0x338   :  { %2584 = vmatprep.subr.mxu1 %v2722_v28 }
 0x339   :  { %2585 = vmatpush3.msra.mxu1 %v1459_v46 }
 0x33a   :  { %2586 = vmatprep.subr.mxu1 %v2722_v28 }
 0x33b   :  { %2587 = vmatpush3.msra.mxu1 %v1458_v52 }
 0x33c   :  { %2588 = vmatprep.subr.mxu1 %v2722_v28 }
 0x33d   :  { %2589 = vmatpush3.msra.mxu1 %v1457_v54 }
 0x33e   :  { %2590 = vmatprep.subr.mxu1 %v2722_v28 }
 0x33f   :  { %2591 = vmatpush3.msra.mxu1 %v1456_v56 }
 0x340   :  { %2592 = vmatprep.subr.mxu1 %v2722_v28 }
 0x341   :  { %2593 = vmatpush3.msra.mxu1 %v1455_v47 }
 0x342   :  { %2594 = vmatprep.subr.mxu1 %v2722_v28 }
 0x343   :  { %2595 = vmatpush3.msra.mxu1 %v1454_v59 }
 0x344   :  { %2596 = vmatprep.subr.mxu1 %v2722_v28 }
 0x345   :  { %2597 = vmatpush3.msra.mxu1 %v1453_v61 }
 0x346   :  { %2598 = vmatprep.subr.mxu1 %v2722_v28 }
 0x347   :  { %2599 = vmatpush3.msra.mxu1 %v1452_v63 }
 0x348   :  { %2600 = vmatprep.subr.mxu1 %v2722_v28 }
 0x349   :  { %2601 = vmatpush3.msra.mxu1 %v1451_v0 }
 0x34a   :  { %2602 = vmatprep.subr.mxu1 %v2722_v28 }
 0x34b   :  { %2603 = vmatpush3.msra.mxu1 %v1450_v1 }
 0x34c   :  { %2604 = vmatprep.subr.mxu1 %v2722_v28 }
 0x34d   :  { %2605 = vmatpush3.msra.mxu1 %v1449_v2 }
 0x3ce   :  { %v1285_v3 = vpop.f32.mrf.mxu1 }
 0x3d0   :  { %v2468_v4 = vpop.f32.mrf.mxu1 }
 0x3d3   :  { %v1355_v5 = vpop.f32.mrf.mxu0 }
 0x3d4   :  { %v1356_v7 = vadd.f32 %v1355_v5, %v1285_v3 }
 0x3d5   :  { %v2503_v6 = vpop.f32.mrf.mxu0 }
 0x3ee   :  { %v1425_v8 = vpop.f32.mrf.mxu1 }
 0x3ef   :  { %v1429_v10 = vadd.f32 %v1425_v8, %v1356_v7 }
 0x3f0   :  { %v2538_v11 = vpop.f32.mrf.mxu1 }
 0x3f1   :  { %v1435_v12 = vadd.f32 %v1793_v9, %v1429_v10 }
 0x3f3   :  { %v1436_v13 = vmax.f32 %v1435_v12, 0.0 }
 0x3f5   :  { %1437 = vst [vmem:[#allocation2] sm:$0xff] %v1436_v13 }
 0x3fc   :  { %v1438_v15 = vld [vmem:[#allocation2] ss:$2 sm:$0xf]  ;;  %v1439_v16 = vld [vmem:[#allocation2 + $0x1] ss:$2 sm:$0xf] }
 0x3fd   :  { %2572 = vmatmul.mubr.f32.vlgmr.msra.gmra.mxu0 %v1438_v15  ;;  %v1441_v18 = vrot.slane %v1439_v16, 7 }
 0x3fe   :  { %2610 = vmatpush3.msra.mxu0 %v1498_v14  ;;  %2641 = vmatprep.mubr.msk.f32.mxu0 %vm2723_vm2, %v2722_v28 }
 0x3ff   :  { %2611 = vmatprep.subr.mxu0 %v2722_v28  ;;  %v1443_v20 = vsel %vm67_vm0, 0.0, %v1441_v18 }
 0x400   :  { %2612 = vmatpush3.msra.mxu0 %v1497_v17  ;;  %v1445_v40 = vsel %vm1444_vm5, %v1443_v20, 0.0 }
 0x401   :  { %2613 = vmatprep.subr.mxu0 %v2722_v28  ;;  %v1447_v21 = vsel %vm1446_vm6, %v1445_v40, %v1441_v18 }
 0x402   :  { %2614 = vmatpush3.msra.mxu0 %v1496_v19  ;;  %2607 = vmatmul.mubr.f32.vlgmr.msra.gmra.mxu1 %v1447_v21 }
 0x403   :  { %2615 = vmatprep.subr.mxu0 %v2722_v28 }
 0x404   :  { %2616 = vmatpush3.msra.mxu0 %v1495_v22 }
 0x405   :  { %2617 = vmatprep.subr.mxu0 %v2722_v28 }
 0x406   :  { %2618 = vmatpush3.msra.mxu0 %v1494_v23 }
 0x407   :  { %2619 = vmatprep.subr.mxu0 %v2722_v28 }
 0x408   :  { %2620 = vmatpush3.msra.mxu0 %v1493_v24 }
 0x409   :  { %2621 = vmatprep.subr.mxu0 %v2722_v28 }
 0x40a   :  { %2622 = vmatpush3.msra.mxu0 %v1492_v25 }
 0x40b   :  { %2623 = vmatprep.subr.mxu0 %v2722_v28 }
 0x40c   :  { %2624 = vmatpush3.msra.mxu0 %v1491_v26 }
 0x40d   :  { %2625 = vmatprep.subr.mxu0 %v2722_v28 }
 0x40e   :  { %2626 = vmatpush3.msra.mxu0 %v1490_v27 }
 0x40f   :  { %2627 = vmatprep.subr.mxu0 %v2722_v28 }
 0x410   :  { %2628 = vmatpush3.msra.mxu0 %v1489_v29 }
 0x411   :  { %2629 = vmatprep.subr.mxu0 %v2722_v28 }
 0x412   :  { %2630 = vmatpush3.msra.mxu0 %v1488_v30 }
 0x413   :  { %2631 = vmatprep.subr.mxu0 %v2722_v28 }
 0x414   :  { %2632 = vmatpush3.msra.mxu0 %v1487_v31 }
 0x415   :  { %2633 = vmatprep.subr.mxu0 %v2722_v28 }
 0x416   :  { %2634 = vmatpush3.msra.mxu0 %v1486_v32 }
 0x417   :  { %2635 = vmatprep.subr.mxu0 %v2722_v28 }
 0x418   :  { %2636 = vmatpush3.msra.mxu0 %v1485_v33 }
 0x419   :  { %2637 = vmatprep.subr.mxu0 %v2722_v28 }
 0x41a   :  { %2638 = vmatpush3.msra.mxu0 %v1484_v34 }
 0x41b   :  { %2639 = vmatprep.subr.mxu0 %v2722_v28 }
 0x41c   :  { %2640 = vmatpush3.msra.mxu0 %v1483_v35 }
 0x41d   :  { %2642 = vmatmul.mubr.f32.vlgmr.msra.gmra.mxu0 %v1439_v16 }
 0x4bd   :  { %v1565_v36 = vpop.f32.mrf.mxu0 }
 0x4bf   :  { %v2573_v37 = vpop.f32.mrf.mxu0 }
 0x4c2   :  { %v1635_v38 = vpop.f32.mrf.mxu1 }
 0x4c3   :  { %v1636_v41 = vadd.f32 %v1635_v38, %v1565_v36 }
 0x4c4   :  { %v2608_v39 = vpop.f32.mrf.mxu1 }
 0x4dd   :  { %v1705_v42 = vpop.f32.mrf.mxu0 }
 0x4de   :  { %v1709_v44 = vadd.f32 %v1705_v42, %v1636_v41 }
 0x4df   :  { %v2643_v45 = vpop.f32.mrf.mxu0 }
 0x4e0   :  { %v1715_v46 = vadd.f32 %v1794_v43, %v1709_v44 }
 0x4e2   :  { %v1718_v48 = vrot.slane %v1715_v46, 1  ;;  %1716 = vst [vmem:[#allocation6] sm:$0xf] %v1715_v46 }
 0x4e4   :  { %v1720_v49 = vadd.f32 %v1718_v48, %v1715_v46 }
 0x4e6   :  { %v1722_v50 = vrot.slane %v1720_v49, 1 }
 0x4e8   :  { %v1724_v28 = vsel %vm67_vm0, %v1720_v49, %v1722_v50 }
 0x4e9   :  { %v1725_v51 = vmul.f32 0.5, %v1724_v28 }
 0x4eb   :  { %v1726_v52 = vmul.f32 %v1725_v51, %v1725_v51 }
 0x4ed   :  { %v1727_v53 = vsel %vm1444_vm5, %v1726_v52, 0.0 }
 0x4ee   :  { %1728 = vadd.xlane.f32.xlu0 %v1727_v53 }
 0x4ef   :  { %2684 = shalt.err (!%p2681_p9)
}
 0x4f0   :  { %1743 = dma.vmem_to_hbm [thread:$0]  %s1741_s10, 64, %s3000_s3, [#allocation5]  }
 0x4f1   :  { %s2725_s13 = smov [#allocation7]  }
 0x4f2   :  { %s1750_s14 = sshll.u32 %s2725_s13, 4  ;;  %s1751_s14 = int_to_ptr.vmem [resolvable:$true] %s1750_s14 }
 0x4f3   :  { %s2693_s15 = scalar_lea.vmem %s1751_s14, 32  ;;  %p2698_p11 = scmp.lt.s32.totalorder %s1751_s14, %s1751_s14 }
 0x4f4   :  { %p2694_p10 = scmp.ne.s32.totalorder %s1751_s14, %s2693_s15  ;;  %p2699_p12 = scmp.lt.s32.totalorder %s2693_s15, %s2693_s15 }
 0x4f6   :  { %p2700_p13 = por %p2699_p12, %p2698_p11 }
 0x4f8   :  { %p2701_p0 = pnand %p2700_p13, %p2694_p10 }
 0x577   :  { %v1729_v54 = vpop.xlane.xlu0 %1728 }
 0x578   :  { %v1730_v55 = vmax.f32 %v1729_v54, 1e-24 }
 0x57a   :  { %2651 = vrsqrt.f32 %v1730_v55 }
 0x587   :  { %v2652_v56 = vpop.eup %2651 }
 0x588   :  { %v1732_v57 = vmul.f32 %v2652_v56, %v1725_v51 }
 0x58a   :  { %1733 = vst [vmem:[#allocation7] sm:$0x3] %v1732_v57 }
 0x58b   :  { %2704 = shalt.err (!%p2701_p0)
}
 0x58c   :  { %1753 = dma.vmem_to_hbm [thread:$0]  %s1751_s14, 32, %s3001_s4, [#allocation8]  }
 0x58d   :  { %2715 = dma.done.wait [#allocation5], 64  }
 0x58e   :  { %2716 = vsyncadd [#allocation5], 4294967232 }
 0x58f   :  { %2717 = dma.done.wait [#allocation8], 32  }
 0x590   :  { %2718 = vsyncadd [#allocation8], 4294967264 }
 0x591   :  { %1760 = vsyncpa [#allocation4], 1 }
 0x592   :  { %1761 = vsyncpa [#allocation5], 1 }
 0x593   :  { %1762 = vsyncpa [#allocation8], 1 }

</bundles_post_ra>
